<compile_context>
chip_gen: v6e
topology: v6e:2x2x1
jax: 0.10.0
libtpu: 0.0.40
codegen_flags: <defaults>
</compile_context>

<pallas_src>
import functools

import numpy as np
import jax
import jax.numpy as jnp
from jax import lax
from jax.experimental import pallas as pl
from jax.experimental.pallas import tpu as pltpu


# ---------------------------------------------------------------------------
# Fused per-flow kernel: Invertible1x1Conv + WN + affine coupling
# ---------------------------------------------------------------------------
def _flow_kernel(winv_ref, sw_ref, start_b_ref, in_w_ref, cond_w_ref, bias_ref,
                 rs_w_ref, rs_b_ref, end_w_ref, end_b_ref,
                 sp_ref, aud_ref, new_aud_ref, s_out_ref, *, t_seg):
    f32 = jnp.float32
    cd = sw_ref.dtype                           # matmul operand dtype (f32 / bf16)
    c = winv_ref.shape[0]
    n_ch = sw_ref.shape[0]
    n_layers = in_w_ref.shape[0]
    coff = end_w_ref.shape[0] // 2              # sublane-aligned row offset (ceil8(c))

    sp = sp_ref[...].astype(cd)                 # (M, W)
    aud_in = aud_ref[...].astype(cd)            # (c, W)
    w_blk = aud_in.shape[-1]

    # Invertible 1x1 conv + folded start conv: two matmuls off one operand load.
    full = jnp.dot(winv_ref[...], aud_in, preferred_element_type=f32)             # (c, W)
    a = jnp.dot(sw_ref[...], aud_in, preferred_element_type=f32) + start_b_ref[...]  # (C, W)

    # Per-batch-segment boundary masks, (1, W) float, computed once per dilation.
    lane = lax.broadcasted_iota(jnp.int32, (1, w_blk), 1)
    if t_seg & (t_seg - 1) == 0:
        pos = lane & (t_seg - 1)
    else:
        pos = lane % t_seg
    lo_m = [(pos >= (1 << i)).astype(f32) for i in range(n_layers)]
    hi_m = [(pos < (t_seg - (1 << i))).astype(f32) for i in range(n_layers)]

    output = jnp.zeros((n_ch, w_blk), f32)
    # TODO(synk): at production n_layers=8 replace the static unroll with
    #             lax.fori_loop to bound live ranges; fine at n_layers=2.
    for i in range(n_layers):
        d = 1 << i
        # 3-tap dilated conv as ONE deep-K matmul: taps built in-register with
        # roll (XLU) + a (1, W) float boundary mask; no pad / HBM traffic.
        x_lo = pltpu.roll(a, shift=d, axis=1) * lo_m[i]            # x[t - d]
        x_hi = pltpu.roll(a, shift=w_blk - d, axis=1) * hi_m[i]    # x[t + d]
        xs = jnp.concatenate([x_lo, a, x_hi], axis=0).astype(cd)   # (3C, W)
        # conditioning computed per layer (no (2*C*L, W) cond resident)
        pre = (jnp.dot(in_w_ref[i], xs, preferred_element_type=f32)
               + jnp.dot(cond_w_ref[i], sp, preferred_element_type=f32)
               + bias_ref[i])
        acts = jnp.tanh(pre[:n_ch, :]) * jax.nn.sigmoid(pre[n_ch:, :])
        rs = jnp.dot(rs_w_ref[i], acts.astype(cd),
                     preferred_element_type=f32) + rs_b_ref[i]
        if i < n_layers - 1:                   # last layer has skip rows only
            a = a + rs[:n_ch, :]
        output = output + rs[n_ch:, :]

    # End 1x1 conv + affine coupling as a SINGLE stacked matmul.  Rows [0:c]
    # hold the log_s rows placed at sublanes n_half..c-1 (zeros above), rows
    # [coff:coff+c] hold the b rows likewise, so
    #   new_aud = exp(s)*full + b
    # leaves audio_0 untouched (exp(0)*x + 0, exact in f32 and bf16) and applies
    # exp(log_s)*audio_1 + b to the bottom half -- only 8-aligned slices needed.
    sb = jnp.dot(end_w_ref[...], output.astype(cd),
                 preferred_element_type=f32) + end_b_ref[...]      # (2*coff, W)
    s_full = sb[0:c, :]
    b_full = sb[coff:coff + c, :]
    new_aud_ref[...] = jnp.exp(s_full) * full + b_full
    s_out_ref[...] = s_full                   # wrapper slices rows n_half: -> log_s


def flow_step(fp, aud, sp, t_seg, batches_per_block=None):
    """One full flow (1x1 conv + WN + coupling) as a single pallas_call.

    aud: (c, B*T)  sp: (n_mel*n_group, B*T)  -- batch folded onto the lane axis.
    batches_per_block=None folds everything into one block (best on the single
    TC of v5e/v6e); set to 1 on v7x to shard whole-batch blocks across 2 TCs.
    """
    c, W = aud.shape
    M = sp.shape[0]
    n_half = c // 2
    n_ch = fp['sw'].shape[0]
    n_layers = fp['in_w'].shape[0]
    coff2 = fp['end_w'].shape[0]

    assert W % t_seg == 0
    n_seg = W // t_seg
    bpb = n_seg if batches_per_block is None else batches_per_block
    assert n_seg % bpb == 0
    w_blk = bpb * t_seg

    kern = functools.partial(_flow_kernel, t_seg=t_seg)
    zero2 = lambda i: (0, 0)
    zero3 = lambda i: (0, 0, 0)
    lane_blk = lambda i: (0, i)

    new_aud, s_full = pl.pallas_call(
        kern,
        out_shape=(jax.ShapeDtypeStruct((c, W), jnp.float32),
                   jax.ShapeDtypeStruct((c, W), jnp.float32)),
        grid=(W // w_blk,),
        in_specs=[
            pl.BlockSpec((c, c), zero2),                             # winv
            pl.BlockSpec((n_ch, c), zero2),                          # sw = start_w @ winv_top
            pl.BlockSpec((n_ch, 1), zero2),                          # start_b
            pl.BlockSpec((n_layers, 2 * n_ch, 3 * n_ch), zero3),     # in_w (tap-stacked)
            pl.BlockSpec((n_layers, 2 * n_ch, M), zero3),            # cond_w (per-layer)
            pl.BlockSpec((n_layers, 2 * n_ch, 1), zero3),            # cond_b + in_b
            pl.BlockSpec((n_layers, 2 * n_ch, n_ch), zero3),         # rs_w
            pl.BlockSpec((n_layers, 2 * n_ch, 1), zero3),            # rs_b
            pl.BlockSpec((coff2, n_ch), zero2),                      # stacked end weight [s; b]
            pl.BlockSpec((coff2, 1), zero2),                         # stacked end bias
            pl.BlockSpec((M, w_blk), lane_blk),                      # spect (unfolded, folded B)
            pl.BlockSpec((c, w_blk), lane_blk),                      # audio
        ],
        out_specs=(pl.BlockSpec((c, w_blk), lane_blk),
                   pl.BlockSpec((c, w_blk), lane_blk)),
        compiler_params=pltpu.CompilerParams(
            dimension_semantics=("parallel",)),
    )(fp['winv'], fp['sw'], fp['start_b'], fp['in_w'], fp['cond_w'], fp['bias'],
      fp['rs_w'], fp['rs_b'], fp['end_w'], fp['end_b'], sp, aud)

    log_s = s_full[n_half:, :]                # aligned-rows output, sliced in JAX
    return new_aud, log_s


# ---------------------------------------------------------------------------
# WaveGlow forward (glue: upsample, unfold, flow loop)
# ---------------------------------------------------------------------------
def waveglow_forward(prep, spect, audio, hp, batches_per_block=None):
    n_group = hp['n_group']
    n_flows = hp['n_flows']
    n_early_every = hp['n_early_every']
    n_early_size = hp['n_early_size']

    B, n_mel, F = spect.shape
    Wup, bup = prep['upsample']
    stride, K = 256, 1024
    nseg = K // stride                                     # 4 aligned segments

    # ConvTranspose1d as per-segment einsum + overlap-add (no 4x-sized temp).
    Wb = Wup.reshape(n_mel, n_mel, nseg, stride)
    n_blocks = F + nseg - 1
    up_blocks = jnp.zeros((B, n_blocks, n_mel, stride), jnp.float32)
    for s in range(nseg):                                  # 4 static adds
        seg = jnp.einsum('bif,ior->bfor', spect, Wb[:, :, s, :])   # (B, F, n_mel, 256)
        up_blocks = up_blocks.at[:, s:s + F].add(seg)
    up = jnp.transpose(up_blocks, (0, 2, 1, 3)).reshape(B, n_mel, n_blocks * stride)
    up = up + bup[None, :, None]

    T_audio = audio.shape[1]
    assert up.shape[2] >= T_audio
    up = up[:, :, :T_audio]

    # unfold / permute glue
    T = T_audio // n_group
    sp = up.reshape(B, n_mel, T, n_group)
    sp = jnp.transpose(sp, (0, 2, 1, 3)).reshape(B, T, n_mel * n_group)
    sp = jnp.transpose(sp, (0, 2, 1))                                  # (B, M, T)
    aud = jnp.transpose(audio.reshape(B, T, n_group), (0, 2, 1))       # (B, n_group, T)

    # Fold the batch onto the lane axis (rows, B*T); blocks always contain whole
    # batch segments so the dilated-conv halos never cross a block boundary.
    sp2 = jnp.transpose(sp, (1, 0, 2)).reshape(n_mel * n_group, B * T)
    aud2 = jnp.transpose(aud, (1, 0, 2)).reshape(n_group, B * T)

    output_audio, log_s_list, log_det_W_list = [], [], []
    for k in range(n_flows):
        if k % n_early_every == 0 and k > 0:
            output_audio.append(aud2[:n_early_size, :])
            aud2 = aud2[n_early_size:, :]
        fp = prep['flows'][k]
        log_det_W_list.append(B * T * fp['logabs_det'])
        aud2, log_s2 = flow_step(fp, aud2, sp2, T, batches_per_block)  # fused Pallas flow
        n_half = log_s2.shape[0]
        log_s_list.append(jnp.transpose(log_s2.reshape(n_half, B, T), (1, 0, 2)))
    output_audio.append(aud2)

    out2 = jnp.concatenate(output_audio, axis=0)                       # (n_group, B*T)
    out = jnp.transpose(out2.reshape(n_group, B, T), (1, 0, 2))        # (B, n_group, T)
    return out, log_s_list, log_det_W_list


# ---------------------------------------------------------------------------
# Parameter init (natural PyTorch shapes) and one-time kernel-layout prepare
# ---------------------------------------------------------------------------
def init_params(key, hp):
    keys = iter(jax.random.split(key, 512))

    def nrm(shape, scale=0.1):
        return (scale * jax.random.normal(next(keys), shape)).astype(jnp.float32)

    n_mel = hp['n_mel_channels']
    n_group = hp['n_group']
    n_ch = hp['n_channels']
    n_layers = hp['n_layers']

    params = {
        'upsample': (nrm((n_mel, n_mel, 1024), 0.02), nrm((n_mel,), 0.01)),
        'convinv': [],
        'WN': [],
    }

    n_half = n_group // 2
    n_rem = n_group
    for k in range(hp['n_flows']):
        if k % hp['n_early_every'] == 0 and k > 0:
            n_half -= hp['n_early_size'] // 2
            n_rem -= hp['n_early_size']

        # Invertible1x1Conv: orthogonal W from QR, det forced positive.
        wrand = np.asarray(jax.random.normal(next(keys), (n_rem, n_rem)), dtype=np.float64)
        q, _ = np.linalg.qr(wrand)
        if np.linalg.det(q) < 0:
            q[:, 0] = -q[:, 0]
        params['convinv'].append(jnp.asarray(q, jnp.float32))

        wn = {
            'start_w': nrm((n_ch, n_half)),
            'start_b': nrm((n_ch,)),
            'cond_w': nrm((2 * n_ch * n_layers, n_mel * n_group)),
            'cond_b': nrm((2 * n_ch * n_layers,)),
            'in_w': [], 'in_b': [], 'rs_w': [], 'rs_b': [],
            # end conv is zero-initialized in the PyTorch module
            'end_w': jnp.zeros((2 * n_half, n_ch), jnp.float32),
            'end_b': jnp.zeros((2 * n_half,), jnp.float32),
        }
        for i in range(n_layers):
            wn['in_w'].append(nrm((2 * n_ch, n_ch, 3)))     # PyTorch (Cout, Cin, K)
            wn['in_b'].append(nrm((2 * n_ch,)))
            rs = 2 * n_ch if i < n_layers - 1 else n_ch
            wn['rs_w'].append(nrm((rs, n_ch)))
            wn['rs_b'].append(nrm((rs,)))
        params['WN'].append(wn)
    return params


def prepare_params(params, hp, compute_dtype=jnp.float32):
    """One-time weight re-layout for the fused kernels (hoisted out of forward).

    compute_dtype: matmul-operand dtype (jnp.float32 here; jnp.bfloat16 at
    production sizes for ~3x MXU throughput and half the DMA/VMEM bytes).
    """
    assert hp['kernel_size'] == 3
    n_ch = hp['n_channels']
    n_layers = hp['n_layers']
    f32 = jnp.float32
    cd = compute_dtype
    prep = {'upsample': (params['upsample'][0].astype(f32),
                         params['upsample'][1].astype(f32)),
            'flows': []}

    for k, wn in enumerate(params['WN']):
        Winv = params['convinv'][k].astype(f32)
        c = Winv.shape[0]
        n_half = c // 2
        coff = ((c + 7) // 8) * 8

        # Fold start 1x1 into the top half of the invertible conv (float64 fold).
        sw = jnp.asarray(np.asarray(wn['start_w'], dtype=np.float64)
                         @ np.asarray(Winv[:n_half, :], dtype=np.float64), f32)

        cw = wn['cond_w'].astype(f32)
        cb = wn['cond_b'].astype(f32)
        in_w_stk, cond_w_stk, bias_stk, rs_w_stk, rs_b_stk = [], [], [], [], []
        for i in range(n_layers):
            w = wn['in_w'][i].astype(f32)                                   # (2C, C, 3)
            in_w_stk.append(jnp.transpose(w, (0, 2, 1)).reshape(2 * n_ch, 3 * n_ch))
            cond_w_stk.append(cw[i * 2 * n_ch:(i + 1) * 2 * n_ch, :])
            bias_stk.append((cb[i * 2 * n_ch:(i + 1) * 2 * n_ch]
                             + wn['in_b'][i].astype(f32)).reshape(-1, 1))
            rw = wn['rs_w'][i].astype(f32)
            rb = wn['rs_b'][i].astype(f32)
            if i == n_layers - 1:
                # last layer has only skip channels; place them in the skip half
                rw = jnp.concatenate([jnp.zeros((n_ch, n_ch), f32), rw], axis=0)
                rb = jnp.concatenate([jnp.zeros((n_ch,), f32), rb], axis=0)
            rs_w_stk.append(rw)
            rs_b_stk.append(rb.reshape(-1, 1))

        # Stacked end weight: rows [0:c] = log_s rows placed at sublanes
        # n_half..c-1 (zeros above / below), rows [coff:coff+c] = b rows likewise.
        end_w = wn['end_w'].astype(f32)                                     # (2*n_half, C)
        end_b = wn['end_b'].astype(f32)
        zr = jnp.zeros((n_half, n_ch), f32)
        zt = jnp.zeros((coff - c, n_ch), f32)
        s_rows = jnp.concatenate([zr, end_w[n_half:], zt], axis=0)          # (coff, C)
        b_rows = jnp.concatenate([zr, end_w[:n_half], zt], axis=0)
        end_stk_w = jnp.concatenate([s_rows, b_rows], axis=0)               # (2*coff, C)
        zb = jnp.zeros((n_half,), f32)
        ztb = jnp.zeros((coff - c,), f32)
        end_stk_b = jnp.concatenate([
            jnp.concatenate([zb, end_b[n_half:], ztb]),
            jnp.concatenate([zb, end_b[:n_half], ztb])]).reshape(-1, 1)

        _, logabs = jnp.linalg.slogdet(Winv)
        prep['flows'].append(dict(
            winv=Winv.astype(cd),
            sw=sw.astype(cd),
            start_b=wn['start_b'].astype(f32).reshape(-1, 1),
            in_w=jnp.stack(in_w_stk).astype(cd),
            cond_w=jnp.stack(cond_w_stk).astype(cd),
            bias=jnp.stack(bias_stk),
            rs_w=jnp.stack(rs_w_stk).astype(cd),
            rs_b=jnp.stack(rs_b_stk),
            end_w=end_stk_w.astype(cd),
            end_b=end_stk_b,
            logabs_det=logabs,
        ))
    return prep


# ---------------------------------------------------------------------------
# Pure-JAX reference (mirrors the PyTorch module) for a numerical self-check
# ---------------------------------------------------------------------------
def _conv1d_ref(x, w, b, dilation=1, padding=0):
    out = lax.conv_general_dilated(
        x, w, window_strides=(1,), padding=[(padding, padding)],
        rhs_dilation=(dilation,), dimension_numbers=('NCH', 'OIH', 'NCH'))
    return out + b[None, :, None]


def _wn_ref(wn, audio0, spect, n_ch, n_layers):
    a = _conv1d_ref(audio0, wn['start_w'][:, :, None], wn['start_b'])
    output = jnp.zeros_like(a)
    cond = _conv1d_ref(spect, wn['cond_w'][:, :, None], wn['cond_b'])
    for i in range(n_layers):
        d = 2 ** i
        in_res = _conv1d_ref(a, wn['in_w'][i], wn['in_b'][i], dilation=d, padding=d)
        pre = in_res + cond[:, i * 2 * n_ch:(i + 1) * 2 * n_ch, :]
        acts = jnp.tanh(pre[:, :n_ch]) * jax.nn.sigmoid(pre[:, n_ch:])
        rs = _conv1d_ref(acts, wn['rs_w'][i][:, :, None], wn['rs_b'][i])
        if i < n_layers - 1:
            a = a + rs[:, :n_ch]
            output = output + rs[:, n_ch:]
        else:
            output = output + rs
    return _conv1d_ref(output, wn['end_w'][:, :, None], wn['end_b'])


def waveglow_forward_ref(params, spect, audio, hp):
    n_group = hp['n_group']
    n_ch = hp['n_channels']
    n_layers = hp['n_layers']
    B, n_mel, F = spect.shape
    Wup, bup = params['upsample']
    stride, K = 256, 1024
    Lup = (F - 1) * stride + K
    up = jnp.zeros((B, n_mel, Lup), jnp.float32)
    for f in range(F):
        up = up.at[:, :, f * stride:f * stride + K].add(
            jnp.einsum('bi,iok->bok', spect[:, :, f], Wup))
    up = up + bup[None, :, None]
    T_audio = audio.shape[1]
    up = up[:, :, :T_audio]
    n_groups_t = T_audio // n_group
    sp = up.reshape(B, n_mel, n_groups_t, n_group)
    sp = jnp.transpose(sp, (0, 2, 1, 3)).reshape(B, n_groups_t, n_mel * n_group)
    sp = jnp.transpose(sp, (0, 2, 1))
    aud = jnp.transpose(audio.reshape(B, n_groups_t, n_group), (0, 2, 1))

    output_audio, log_s_list, log_det_W_list = [], [], []
    for k in range(hp['n_flows']):
        if k % hp['n_early_every'] == 0 and k > 0:
            output_audio.append(aud[:, :hp['n_early_size'], :])
            aud = aud[:, hp['n_early_size']:, :]
        W = params['convinv'][k]
        _, logabs = jnp.linalg.slogdet(W)
        log_det_W_list.append(B * n_groups_t * logabs)
        aud = jnp.einsum('oc,bct->bot', W, aud)
        n_half = aud.shape[1] // 2
        a0, a1 = aud[:, :n_half], aud[:, n_half:]
        out = _wn_ref(params['WN'][k], a0, sp, n_ch, n_layers)
        log_s = out[:, n_half:]
        b_aff = out[:, :n_half]
        a1 = jnp.exp(log_s) * a1 + b_aff
        log_s_list.append(log_s)
        aud = jnp.concatenate([a0, a1], axis=1)
    output_audio.append(aud)
    return jnp.concatenate(output_audio, axis=1), log_s_list, log_det_W_list


# ---------------------------------------------------------------------------
if __name__ == "__main__":
    hp = dict(
        n_mel_channels=8,
        n_flows=4,
        n_group=8,
        n_early_every=2,
        n_early_size=2,
        n_layers=2,
        n_channels=16,
        kernel_size=3,
    )

    key = jax.random.PRNGKey(0)
    kp, ks, ka, kc = jax.random.split(key, 4)
    params = init_params(kp, hp)

    B, F, T_audio = 2, 4, 1024            # upsampled len = 3*256 + 1024 = 1792 >= 1024
    spect = jax.random.normal(ks, (B, hp['n_mel_channels'], F), jnp.float32)
    audio = jax.random.normal(ka, (B, T_audio), jnp.float32)

    fwd = jax.jit(functools.partial(waveglow_forward, hp=hp))

    # --- numerical self-check against the pure-JAX reference.  The module
    #     zero-inits the end conv (log_s == 0), which would leave most of the
    #     WN untested, so the check uses non-zero end weights.
    chk_params = {'upsample': params['upsample'],
                  'convinv': params['convinv'],
                  'WN': [dict(wn) for wn in params['WN']]}
    kiter = iter(jax.random.split(kc, 2 * hp['n_flows']))
    for wn in chk_params['WN']:
        wn['end_w'] = 0.1 * jax.random.normal(next(kiter), wn['end_w'].shape, jnp.float32)
        wn['end_b'] = 0.1 * jax.random.normal(next(kiter), wn['end_b'].shape, jnp.float32)
    out_p, logs_p, dets_p = fwd(prepare_params(chk_params, hp), spect, audio)
    out_r, logs_r, dets_r = waveglow_forward_ref(chk_params, spect, audio, hp)
    np.testing.assert_allclose(np.asarray(out_p), np.asarray(out_r), rtol=1e-3, atol=1e-3)
    for lp, lr in zip(logs_p, logs_r):
        np.testing.assert_allclose(np.asarray(lp), np.asarray(lr), rtol=1e-3, atol=1e-3)
    for dp, dr in zip(dets_p, dets_r):
        np.testing.assert_allclose(np.asarray(dp), np.asarray(dr), rtol=1e-3, atol=1e-3)

    # --- spec-faithful forward (end conv zero-initialized as in the module).
    prep = prepare_params(params, hp)
    out_audio, log_s_list, log_det_W_list = fwd(prep, spect, audio)

    jax.block_until_ready(out_audio)
    for x in log_s_list:
        jax.block_until_ready(x)
    for x in log_det_W_list:
        jax.block_until_ready(x)

    assert out_audio.shape == (B, hp['n_group'], T_audio // hp['n_group'])
    assert len(log_s_list) == hp['n_flows'] and len(log_det_W_list) == hp['n_flows']
    print("KERNEL_OK")
</pallas_src>

<mosaic_0001>
module attributes {stable_mosaic.version = 11 : i64} {
  func.func @_flow_kernel(%arg0: i32, %arg1: memref<6x6xf32, #tpu.memory_space<vmem>>, %arg2: memref<16x6xf32, #tpu.memory_space<vmem>>, %arg3: memref<16x1xf32, #tpu.memory_space<vmem>>, %arg4: memref<2x32x48xf32, #tpu.memory_space<vmem>>, %arg5: memref<2x32x64xf32, #tpu.memory_space<vmem>>, %arg6: memref<2x32x1xf32, #tpu.memory_space<vmem>>, %arg7: memref<2x32x16xf32, #tpu.memory_space<vmem>>, %arg8: memref<2x32x1xf32, #tpu.memory_space<vmem>>, %arg9: memref<16x16xf32, #tpu.memory_space<vmem>>, %arg10: memref<16x1xf32, #tpu.memory_space<vmem>>, %arg11: memref<64x256xf32, #tpu.memory_space<vmem>>, %arg12: memref<6x256xf32, #tpu.memory_space<vmem>>, %arg13: memref<6x256xf32, #tpu.memory_space<vmem>>, %arg14: memref<6x256xf32, #tpu.memory_space<vmem>>) attributes {dimension_semantics = [#tpu.dimension_semantics<parallel>], iteration_bounds = array<i64: 1>, scalar_prefetch = 0 : i64, scratch_operands = 0 : i64, tpu.core_type = #tpu.core_type<tc>, window_params = [{pipeline_mode = #tpu.pipeline_mode<synchronous>, transform_indices = @transform_0, window_bounds = array<i64: 6, 6>}, {pipeline_mode = #tpu.pipeline_mode<synchronous>, transform_indices = @transform_1, window_bounds = array<i64: 16, 6>}, {pipeline_mode = #tpu.pipeline_mode<synchronous>, transform_indices = @transform_2, window_bounds = array<i64: 16, 1>}, {pipeline_mode = #tpu.pipeline_mode<synchronous>, transform_indices = @transform_3, window_bounds = array<i64: 2, 32, 48>}, {pipeline_mode = #tpu.pipeline_mode<synchronous>, transform_indices = @transform_4, window_bounds = array<i64: 2, 32, 64>}, {pipeline_mode = #tpu.pipeline_mode<synchronous>, transform_indices = @transform_5, window_bounds = array<i64: 2, 32, 1>}, {pipeline_mode = #tpu.pipeline_mode<synchronous>, transform_indices = @transform_6, window_bounds = array<i64: 2, 32, 16>}, {pipeline_mode = #tpu.pipeline_mode<synchronous>, transform_indices = @transform_7, window_bounds = array<i64: 2, 32, 1>}, {pipeline_mode = #tpu.pipeline_mode<synchronous>, transform_indices = @transform_8, window_bounds = array<i64: 16, 16>}, {pipeline_mode = #tpu.pipeline_mode<synchronous>, transform_indices = @transform_9, window_bounds = array<i64: 16, 1>}, {transform_indices = @transform_10, window_bounds = array<i64: 64, 256>}, {transform_indices = @transform_11, window_bounds = array<i64: 6, 256>}, {transform_indices = @transform_12, window_bounds = array<i64: 6, 256>}, {transform_indices = @transform_13, window_bounds = array<i64: 6, 256>}]} {
    %c0 = arith.constant 0 : index
    %c0_0 = arith.constant 0 : index
    %0 = vector.load %arg11[%c0, %c0_0] : memref<64x256xf32, #tpu.memory_space<vmem>>, vector<64x256xf32>
    %c0_1 = arith.constant 0 : index
    %c0_2 = arith.constant 0 : index
    %1 = vector.load %arg12[%c0_1, %c0_2] : memref<6x256xf32, #tpu.memory_space<vmem>>, vector<6x256xf32>
    %c0_3 = arith.constant 0 : index
    %c0_4 = arith.constant 0 : index
    %2 = vector.load %arg1[%c0_3, %c0_4] : memref<6x6xf32, #tpu.memory_space<vmem>>, vector<6x6xf32>
    %cst = arith.constant dense<0.000000e+00> : vector<6x256xf32>
    %3 = tpu.matmul %2, %1, %cst {dimension_numbers = #tpu.dot_dimension_numbers<[1], [0], [0], [1], [0, 0, 1, 1], [], []>} : vector<6x6xf32>, vector<6x256xf32>, vector<6x256xf32> -> vector<6x256xf32>
    %c0_5 = arith.constant 0 : index
    %c0_6 = arith.constant 0 : index
    %4 = vector.load %arg2[%c0_5, %c0_6] : memref<16x6xf32, #tpu.memory_space<vmem>>, vector<16x6xf32>
    %cst_7 = arith.constant dense<0.000000e+00> : vector<16x256xf32>
    %5 = tpu.matmul %4, %1, %cst_7 {dimension_numbers = #tpu.dot_dimension_numbers<[1], [0], [0], [1], [0, 0, 1, 1], [], []>} : vector<16x6xf32>, vector<6x256xf32>, vector<16x256xf32> -> vector<16x256xf32>
    %c0_8 = arith.constant 0 : index
    %c0_9 = arith.constant 0 : index
    %6 = vector.load %arg3[%c0_8, %c0_9] : memref<16x1xf32, #tpu.memory_space<vmem>>, vector<16x1xf32>
    %7 = vector.broadcast %6 : vector<16x1xf32> to vector<16x256xf32>
    %8 = arith.addf %5, %7 : vector<16x256xf32>
    %9 = tpu.iota {dimensions = array<i32: 1>} : vector<1x256xi32>
    %c127_i32 = arith.constant 127 : i32
    %10 = vector.broadcast %c127_i32 : i32 to vector<1x256xi32>
    %11 = arith.andi %9, %10 : vector<1x256xi32>
    %c1_i32 = arith.constant 1 : i32
    %12 = vector.broadcast %c1_i32 : i32 to vector<1x256xi32>
    %13 = arith.cmpi sge, %11, %12 : vector<1x256xi32>
    %14 = arith.extui %13 : vector<1x256xi1> to vector<1x256xi32>
    %15 = arith.sitofp %14 : vector<1x256xi32> to vector<1x256xf32>
    %c2_i32 = arith.constant 2 : i32
    %16 = vector.broadcast %c2_i32 : i32 to vector<1x256xi32>
    %17 = arith.cmpi sge, %11, %16 : vector<1x256xi32>
    %18 = arith.extui %17 : vector<1x256xi1> to vector<1x256xi32>
    %19 = arith.sitofp %18 : vector<1x256xi32> to vector<1x256xf32>
    %c127_i32_10 = arith.constant 127 : i32
    %20 = vector.broadcast %c127_i32_10 : i32 to vector<1x256xi32>
    %21 = arith.cmpi slt, %11, %20 : vector<1x256xi32>
    %22 = arith.extui %21 : vector<1x256xi1> to vector<1x256xi32>
    %23 = arith.sitofp %22 : vector<1x256xi32> to vector<1x256xf32>
    %c126_i32 = arith.constant 126 : i32
    %24 = vector.broadcast %c126_i32 : i32 to vector<1x256xi32>
    %25 = arith.cmpi slt, %11, %24 : vector<1x256xi32>
    %26 = arith.extui %25 : vector<1x256xi1> to vector<1x256xi32>
    %27 = arith.sitofp %26 : vector<1x256xi32> to vector<1x256xf32>
    %cst_11 = arith.constant 0.000000e+00 : f32
    %28 = vector.broadcast %cst_11 : f32 to vector<16x256xf32>
    %c1_i32_12 = arith.constant 1 : i32
    %29 = tpu.dynamic_rotate %8 by %c1_i32_12 dim 1 : vector<16x256xf32>, i32 -> vector<16x256xf32>
    %30 = vector.broadcast %15 : vector<1x256xf32> to vector<16x256xf32>
    %31 = arith.mulf %29, %30 : vector<16x256xf32>
    %c255_i32 = arith.constant 255 : i32
    %32 = tpu.dynamic_rotate %8 by %c255_i32 dim 1 : vector<16x256xf32>, i32 -> vector<16x256xf32>
    %33 = vector.broadcast %23 : vector<1x256xf32> to vector<16x256xf32>
    %34 = arith.mulf %32, %33 : vector<16x256xf32>
    %35 = tpu.concatenate %31, %8, %34 in 0 : vector<16x256xf32>, vector<16x256xf32>, vector<16x256xf32> -> vector<48x256xf32>
    %c0_13 = arith.constant 0 : index
    %c0_14 = arith.constant 0 : index
    %c0_15 = arith.constant 0 : index
    %36 = vector.load %arg4[%c0_13, %c0_14, %c0_15] : memref<2x32x48xf32, #tpu.memory_space<vmem>>, vector<1x32x48xf32>
    %37 = vector.shape_cast %36 : vector<1x32x48xf32> to vector<32x48xf32>
    %cst_16 = arith.constant dense<0.000000e+00> : vector<32x256xf32>
    %38 = tpu.matmul %37, %35, %cst_16 {dimension_numbers = #tpu.dot_dimension_numbers<[1], [0], [0], [1], [0, 0, 1, 1], [], []>} : vector<32x48xf32>, vector<48x256xf32>, vector<32x256xf32> -> vector<32x256xf32>
    %c0_17 = arith.constant 0 : index
    %c0_18 = arith.constant 0 : index
    %c0_19 = arith.constant 0 : index
    %39 = vector.load %arg5[%c0_17, %c0_18, %c0_19] : memref<2x32x64xf32, #tpu.memory_space<vmem>>, vector<1x32x64xf32>
    %40 = vector.shape_cast %39 : vector<1x32x64xf32> to vector<32x64xf32>
    %cst_20 = arith.constant dense<0.000000e+00> : vector<32x256xf32>
    %41 = tpu.matmul %40, %0, %cst_20 {dimension_numbers = #tpu.dot_dimension_numbers<[1], [0], [0], [1], [0, 0, 1, 1], [], []>} : vector<32x64xf32>, vector<64x256xf32>, vector<32x256xf32> -> vector<32x256xf32>
    %42 = arith.addf %38, %41 : vector<32x256xf32>
    %c0_21 = arith.constant 0 : index
    %c0_22 = arith.constant 0 : index
    %c0_23 = arith.constant 0 : index
    %43 = vector.load %arg6[%c0_21, %c0_22, %c0_23] : memref<2x32x1xf32, #tpu.memory_space<vmem>>, vector<1x32x1xf32>
    %44 = vector.shape_cast %43 : vector<1x32x1xf32> to vector<32x1xf32>
    %45 = vector.broadcast %44 : vector<32x1xf32> to vector<32x256xf32>
    %46 = arith.addf %42, %45 : vector<32x256xf32>
    %47 = vector.extract_strided_slice %46 {offsets = [0, 0], sizes = [16, 256], strides = [1, 1]} : vector<32x256xf32> to vector<16x256xf32>
    %48 = math.tanh %47 : vector<16x256xf32>
    %49 = vector.extract_strided_slice %46 {offsets = [16, 0], sizes = [16, 256], strides = [1, 1]} : vector<32x256xf32> to vector<16x256xf32>
    %50 = arith.negf %49 : vector<16x256xf32>
    %51 = math.exp %50 : vector<16x256xf32>
    %cst_24 = arith.constant 1.000000e+00 : f32
    %52 = vector.broadcast %cst_24 : f32 to vector<16x256xf32>
    %53 = arith.addf %52, %51 : vector<16x256xf32>
    %54 = arith.divf %52, %53 : vector<16x256xf32>
    %55 = arith.mulf %48, %54 : vector<16x256xf32>
    %c0_25 = arith.constant 0 : index
    %c0_26 = arith.constant 0 : index
    %c0_27 = arith.constant 0 : index
    %56 = vector.load %arg7[%c0_25, %c0_26, %c0_27] : memref<2x32x16xf32, #tpu.memory_space<vmem>>, vector<1x32x16xf32>
    %57 = vector.shape_cast %56 : vector<1x32x16xf32> to vector<32x16xf32>
    %cst_28 = arith.constant dense<0.000000e+00> : vector<32x256xf32>
    %58 = tpu.matmul %57, %55, %cst_28 {dimension_numbers = #tpu.dot_dimension_numbers<[1], [0], [0], [1], [0, 0, 1, 1], [], []>} : vector<32x16xf32>, vector<16x256xf32>, vector<32x256xf32> -> vector<32x256xf32>
    %c0_29 = arith.constant 0 : index
    %c0_30 = arith.constant 0 : index
    %c0_31 = arith.constant 0 : index
    %59 = vector.load %arg8[%c0_29, %c0_30, %c0_31] : memref<2x32x1xf32, #tpu.memory_space<vmem>>, vector<1x32x1xf32>
    %60 = vector.shape_cast %59 : vector<1x32x1xf32> to vector<32x1xf32>
    %61 = vector.broadcast %60 : vector<32x1xf32> to vector<32x256xf32>
    %62 = arith.addf %58, %61 : vector<32x256xf32>
    %63 = vector.extract_strided_slice %62 {offsets = [0, 0], sizes = [16, 256], strides = [1, 1]} : vector<32x256xf32> to vector<16x256xf32>
    %64 = arith.addf %8, %63 : vector<16x256xf32>
    %65 = vector.extract_strided_slice %62 {offsets = [16, 0], sizes = [16, 256], strides = [1, 1]} : vector<32x256xf32> to vector<16x256xf32>
    %66 = arith.addf %28, %65 : vector<16x256xf32>
    %c2_i32_32 = arith.constant 2 : i32
    %67 = tpu.dynamic_rotate %64 by %c2_i32_32 dim 1 : vector<16x256xf32>, i32 -> vector<16x256xf32>
    %68 = vector.broadcast %19 : vector<1x256xf32> to vector<16x256xf32>
    %69 = arith.mulf %67, %68 : vector<16x256xf32>
    %c254_i32 = arith.constant 254 : i32
    %70 = tpu.dynamic_rotate %64 by %c254_i32 dim 1 : vector<16x256xf32>, i32 -> vector<16x256xf32>
    %71 = vector.broadcast %27 : vector<1x256xf32> to vector<16x256xf32>
    %72 = arith.mulf %70, %71 : vector<16x256xf32>
    %73 = tpu.concatenate %69, %64, %72 in 0 : vector<16x256xf32>, vector<16x256xf32>, vector<16x256xf32> -> vector<48x256xf32>
    %c1 = arith.constant 1 : index
    %c0_33 = arith.constant 0 : index
    %c0_34 = arith.constant 0 : index
    %74 = vector.load %arg4[%c1, %c0_33, %c0_34] : memref<2x32x48xf32, #tpu.memory_space<vmem>>, vector<1x32x48xf32>
    %75 = vector.shape_cast %74 : vector<1x32x48xf32> to vector<32x48xf32>
    %cst_35 = arith.constant dense<0.000000e+00> : vector<32x256xf32>
    %76 = tpu.matmul %75, %73, %cst_35 {dimension_numbers = #tpu.dot_dimension_numbers<[1], [0], [0], [1], [0, 0, 1, 1], [], []>} : vector<32x48xf32>, vector<48x256xf32>, vector<32x256xf32> -> vector<32x256xf32>
    %c1_36 = arith.constant 1 : index
    %c0_37 = arith.constant 0 : index
    %c0_38 = arith.constant 0 : index
    %77 = vector.load %arg5[%c1_36, %c0_37, %c0_38] : memref<2x32x64xf32, #tpu.memory_space<vmem>>, vector<1x32x64xf32>
    %78 = vector.shape_cast %77 : vector<1x32x64xf32> to vector<32x64xf32>
    %cst_39 = arith.constant dense<0.000000e+00> : vector<32x256xf32>
    %79 = tpu.matmul %78, %0, %cst_39 {dimension_numbers = #tpu.dot_dimension_numbers<[1], [0], [0], [1], [0, 0, 1, 1], [], []>} : vector<32x64xf32>, vector<64x256xf32>, vector<32x256xf32> -> vector<32x256xf32>
    %80 = arith.addf %76, %79 : vector<32x256xf32>
    %c1_40 = arith.constant 1 : index
    %c0_41 = arith.constant 0 : index
    %c0_42 = arith.constant 0 : index
    %81 = vector.load %arg6[%c1_40, %c0_41, %c0_42] : memref<2x32x1xf32, #tpu.memory_space<vmem>>, vector<1x32x1xf32>
    %82 = vector.shape_cast %81 : vector<1x32x1xf32> to vector<32x1xf32>
    %83 = vector.broadcast %82 : vector<32x1xf32> to vector<32x256xf32>
    %84 = arith.addf %80, %83 : vector<32x256xf32>
    %85 = vector.extract_strided_slice %84 {offsets = [0, 0], sizes = [16, 256], strides = [1, 1]} : vector<32x256xf32> to vector<16x256xf32>
    %86 = math.tanh %85 : vector<16x256xf32>
    %87 = vector.extract_strided_slice %84 {offsets = [16, 0], sizes = [16, 256], strides = [1, 1]} : vector<32x256xf32> to vector<16x256xf32>
    %88 = arith.negf %87 : vector<16x256xf32>
    %89 = math.exp %88 : vector<16x256xf32>
    %cst_43 = arith.constant 1.000000e+00 : f32
    %90 = vector.broadcast %cst_43 : f32 to vector<16x256xf32>
    %91 = arith.addf %90, %89 : vector<16x256xf32>
    %92 = arith.divf %90, %91 : vector<16x256xf32>
    %93 = arith.mulf %86, %92 : vector<16x256xf32>
    %c1_44 = arith.constant 1 : index
    %c0_45 = arith.constant 0 : index
    %c0_46 = arith.constant 0 : index
    %94 = vector.load %arg7[%c1_44, %c0_45, %c0_46] : memref<2x32x16xf32, #tpu.memory_space<vmem>>, vector<1x32x16xf32>
    %95 = vector.shape_cast %94 : vector<1x32x16xf32> to vector<32x16xf32>
    %cst_47 = arith.constant dense<0.000000e+00> : vector<32x256xf32>
    %96 = tpu.matmul %95, %93, %cst_47 {dimension_numbers = #tpu.dot_dimension_numbers<[1], [0], [0], [1], [0, 0, 1, 1], [], []>} : vector<32x16xf32>, vector<16x256xf32>, vector<32x256xf32> -> vector<32x256xf32>
    %c1_48 = arith.constant 1 : index
    %c0_49 = arith.constant 0 : index
    %c0_50 = arith.constant 0 : index
    %97 = vector.load %arg8[%c1_48, %c0_49, %c0_50] : memref<2x32x1xf32, #tpu.memory_space<vmem>>, vector<1x32x1xf32>
    %98 = vector.shape_cast %97 : vector<1x32x1xf32> to vector<32x1xf32>
    %99 = vector.broadcast %98 : vector<32x1xf32> to vector<32x256xf32>
    %100 = arith.addf %96, %99 : vector<32x256xf32>
    %101 = vector.extract_strided_slice %100 {offsets = [16, 0], sizes = [16, 256], strides = [1, 1]} : vector<32x256xf32> to vector<16x256xf32>
    %102 = arith.addf %66, %101 : vector<16x256xf32>
    %c0_51 = arith.constant 0 : index
    %c0_52 = arith.constant 0 : index
    %103 = vector.load %arg9[%c0_51, %c0_52] : memref<16x16xf32, #tpu.memory_space<vmem>>, vector<16x16xf32>
    %cst_53 = arith.constant dense<0.000000e+00> : vector<16x256xf32>
    %104 = tpu.matmul %103, %102, %cst_53 {dimension_numbers = #tpu.dot_dimension_numbers<[1], [0], [0], [1], [0, 0, 1, 1], [], []>} : vector<16x16xf32>, vector<16x256xf32>, vector<16x256xf32> -> vector<16x256xf32>
    %c0_54 = arith.constant 0 : index
    %c0_55 = arith.constant 0 : index
    %105 = vector.load %arg10[%c0_54, %c0_55] : memref<16x1xf32, #tpu.memory_space<vmem>>, vector<16x1xf32>
    %106 = vector.broadcast %105 : vector<16x1xf32> to vector<16x256xf32>
    %107 = arith.addf %104, %106 : vector<16x256xf32>
    %108 = vector.extract_strided_slice %107 {offsets = [0, 0], sizes = [6, 256], strides = [1, 1]} : vector<16x256xf32> to vector<6x256xf32>
    %109 = vector.extract_strided_slice %107 {offsets = [8, 0], sizes = [6, 256], strides = [1, 1]} : vector<16x256xf32> to vector<6x256xf32>
    %110 = math.exp %108 : vector<6x256xf32>
    %111 = arith.mulf %110, %3 : vector<6x256xf32>
    %112 = arith.addf %111, %109 : vector<6x256xf32>
    %c0_56 = arith.constant 0 : index
    %c0_57 = arith.constant 0 : index
    %113 = vector.load %arg13[%c0_56, %c0_57] : memref<6x256xf32, #tpu.memory_space<vmem>>, vector<6x256xf32>
    tpu.vector_store %arg13[%c0_56, %c0_57], %112 {strides = array<i32>} : memref<6x256xf32, #tpu.memory_space<vmem>>, vector<6x256xf32>,
    %c0_58 = arith.constant 0 : index
    %c0_59 = arith.constant 0 : index
    %114 = vector.load %arg14[%c0_58, %c0_59] : memref<6x256xf32, #tpu.memory_space<vmem>>, vector<6x256xf32>
    tpu.vector_store %arg14[%c0_58, %c0_59], %108 {strides = array<i32>} : memref<6x256xf32, #tpu.memory_space<vmem>>, vector<6x256xf32>,
    return
  }
  func.func @transform_0(%arg0: i32) -> (i32, i32) {
    %c0_i32 = arith.constant 0 : i32
    %c0_i32_0 = arith.constant 0 : i32
    %c0_i32_1 = arith.constant 0 : i32
    return %c0_i32, %c0_i32_0 : i32, i32
  }
  func.func @transform_1(%arg0: i32) -> (i32, i32) {
    %c0_i32 = arith.constant 0 : i32
    %c0_i32_0 = arith.constant 0 : i32
    %c0_i32_1 = arith.constant 0 : i32
    return %c0_i32, %c0_i32_0 : i32, i32
  }
  func.func @transform_2(%arg0: i32) -> (i32, i32) {
    %c0_i32 = arith.constant 0 : i32
    %c0_i32_0 = arith.constant 0 : i32
    %c0_i32_1 = arith.constant 0 : i32
    return %c0_i32, %c0_i32_0 : i32, i32
  }
  func.func @transform_3(%arg0: i32) -> (i32, i32, i32) {
    %c0_i32 = arith.constant 0 : i32
    %c0_i32_0 = arith.constant 0 : i32
    %c0_i32_1 = arith.constant 0 : i32
    %c0_i32_2 = arith.constant 0 : i32
    return %c0_i32, %c0_i32_0, %c0_i32_1 : i32, i32, i32
  }
  func.func @transform_4(%arg0: i32) -> (i32, i32, i32) {
    %c0_i32 = arith.constant 0 : i32
    %c0_i32_0 = arith.constant 0 : i32
    %c0_i32_1 = arith.constant 0 : i32
    %c0_i32_2 = arith.constant 0 : i32
    return %c0_i32, %c0_i32_0, %c0_i32_1 : i32, i32, i32
  }
  func.func @transform_5(%arg0: i32) -> (i32, i32, i32) {
    %c0_i32 = arith.constant 0 : i32
    %c0_i32_0 = arith.constant 0 : i32
    %c0_i32_1 = arith.constant 0 : i32
    %c0_i32_2 = arith.constant 0 : i32
    return %c0_i32, %c0_i32_0, %c0_i32_1 : i32, i32, i32
  }
  func.func @transform_6(%arg0: i32) -> (i32, i32, i32) {
    %c0_i32 = arith.constant 0 : i32
    %c0_i32_0 = arith.constant 0 : i32
    %c0_i32_1 = arith.constant 0 : i32
    %c0_i32_2 = arith.constant 0 : i32
    return %c0_i32, %c0_i32_0, %c0_i32_1 : i32, i32, i32
  }
  func.func @transform_7(%arg0: i32) -> (i32, i32, i32) {
    %c0_i32 = arith.constant 0 : i32
    %c0_i32_0 = arith.constant 0 : i32
    %c0_i32_1 = arith.constant 0 : i32
    %c0_i32_2 = arith.constant 0 : i32
    return %c0_i32, %c0_i32_0, %c0_i32_1 : i32, i32, i32
  }
  func.func @transform_8(%arg0: i32) -> (i32, i32) {
    %c0_i32 = arith.constant 0 : i32
    %c0_i32_0 = arith.constant 0 : i32
    %c0_i32_1 = arith.constant 0 : i32
    return %c0_i32, %c0_i32_0 : i32, i32
  }
  func.func @transform_9(%arg0: i32) -> (i32, i32) {
    %c0_i32 = arith.constant 0 : i32
    %c0_i32_0 = arith.constant 0 : i32
    %c0_i32_1 = arith.constant 0 : i32
    return %c0_i32, %c0_i32_0 : i32, i32
  }
  func.func @transform_10(%arg0: i32) -> (i32, i32) {
    %c0_i32 = arith.constant 0 : i32
    %c0_i32_0 = arith.constant 0 : i32
    return %c0_i32, %arg0 : i32, i32
  }
  func.func @transform_11(%arg0: i32) -> (i32, i32) {
    %c0_i32 = arith.constant 0 : i32
    %c0_i32_0 = arith.constant 0 : i32
    return %c0_i32, %arg0 : i32, i32
  }
  func.func @transform_12(%arg0: i32) -> (i32, i32) {
    %c0_i32 = arith.constant 0 : i32
    %c0_i32_0 = arith.constant 0 : i32
    return %c0_i32, %arg0 : i32, i32
  }
  func.func @transform_13(%arg0: i32) -> (i32, i32) {
    %c0_i32 = arith.constant 0 : i32
    %c0_i32_0 = arith.constant 0 : i32
    return %c0_i32, %arg0 : i32, i32
  }
}

module attributes {stable_mosaic.version = 11 : i64} {
  func.func @_flow_kernel(%arg0: i32, %arg1: memref<8x8xf32, #tpu.memory_space<vmem>>, %arg2: memref<16x8xf32, #tpu.memory_space<vmem>>, %arg3: memref<16x1xf32, #tpu.memory_space<vmem>>, %arg4: memref<2x32x48xf32, #tpu.memory_space<vmem>>, %arg5: memref<2x32x64xf32, #tpu.memory_space<vmem>>, %arg6: memref<2x32x1xf32, #tpu.memory_space<vmem>>, %arg7: memref<2x32x16xf32, #tpu.memory_space<vmem>>, %arg8: memref<2x32x1xf32, #tpu.memory_space<vmem>>, %arg9: memref<16x16xf32, #tpu.memory_space<vmem>>, %arg10: memref<16x1xf32, #tpu.memory_space<vmem>>, %arg11: memref<64x256xf32, #tpu.memory_space<vmem>>, %arg12: memref<8x256xf32, #tpu.memory_space<vmem>>, %arg13: memref<8x256xf32, #tpu.memory_space<vmem>>, %arg14: memref<8x256xf32, #tpu.memory_space<vmem>>) attributes {dimension_semantics = [#tpu.dimension_semantics<parallel>], iteration_bounds = array<i64: 1>, scalar_prefetch = 0 : i64, scratch_operands = 0 : i64, tpu.core_type = #tpu.core_type<tc>, window_params = [{pipeline_mode = #tpu.pipeline_mode<synchronous>, transform_indices = @transform_0, window_bounds = array<i64: 8, 8>}, {pipeline_mode = #tpu.pipeline_mode<synchronous>, transform_indices = @transform_1, window_bounds = array<i64: 16, 8>}, {pipeline_mode = #tpu.pipeline_mode<synchronous>, transform_indices = @transform_2, window_bounds = array<i64: 16, 1>}, {pipeline_mode = #tpu.pipeline_mode<synchronous>, transform_indices = @transform_3, window_bounds = array<i64: 2, 32, 48>}, {pipeline_mode = #tpu.pipeline_mode<synchronous>, transform_indices = @transform_4, window_bounds = array<i64: 2, 32, 64>}, {pipeline_mode = #tpu.pipeline_mode<synchronous>, transform_indices = @transform_5, window_bounds = array<i64: 2, 32, 1>}, {pipeline_mode = #tpu.pipeline_mode<synchronous>, transform_indices = @transform_6, window_bounds = array<i64: 2, 32, 16>}, {pipeline_mode = #tpu.pipeline_mode<synchronous>, transform_indices = @transform_7, window_bounds = array<i64: 2, 32, 1>}, {pipeline_mode = #tpu.pipeline_mode<synchronous>, transform_indices = @transform_8, window_bounds = array<i64: 16, 16>}, {pipeline_mode = #tpu.pipeline_mode<synchronous>, transform_indices = @transform_9, window_bounds = array<i64: 16, 1>}, {transform_indices = @transform_10, window_bounds = array<i64: 64, 256>}, {transform_indices = @transform_11, window_bounds = array<i64: 8, 256>}, {transform_indices = @transform_12, window_bounds = array<i64: 8, 256>}, {transform_indices = @transform_13, window_bounds = array<i64: 8, 256>}]} {
    %c0 = arith.constant 0 : index
    %c0_0 = arith.constant 0 : index
    %0 = vector.load %arg11[%c0, %c0_0] : memref<64x256xf32, #tpu.memory_space<vmem>>, vector<64x256xf32>
    %c0_1 = arith.constant 0 : index
    %c0_2 = arith.constant 0 : index
    %1 = vector.load %arg12[%c0_1, %c0_2] : memref<8x256xf32, #tpu.memory_space<vmem>>, vector<8x256xf32>
    %c0_3 = arith.constant 0 : index
    %c0_4 = arith.constant 0 : index
    %2 = vector.load %arg1[%c0_3, %c0_4] : memref<8x8xf32, #tpu.memory_space<vmem>>, vector<8x8xf32>
    %cst = arith.constant dense<0.000000e+00> : vector<8x256xf32>
    %3 = tpu.matmul %2, %1, %cst {dimension_numbers = #tpu.dot_dimension_numbers<[1], [0], [0], [1], [0, 0, 1, 1], [], []>} : vector<8x8xf32>, vector<8x256xf32>, vector<8x256xf32> -> vector<8x256xf32>
    %c0_5 = arith.constant 0 : index
    %c0_6 = arith.constant 0 : index
    %4 = vector.load %arg2[%c0_5, %c0_6] : memref<16x8xf32, #tpu.memory_space<vmem>>, vector<16x8xf32>
    %cst_7 = arith.constant dense<0.000000e+00> : vector<16x256xf32>
    %5 = tpu.matmul %4, %1, %cst_7 {dimension_numbers = #tpu.dot_dimension_numbers<[1], [0], [0], [1], [0, 0, 1, 1], [], []>} : vector<16x8xf32>, vector<8x256xf32>, vector<16x256xf32> -> vector<16x256xf32>
    %c0_8 = arith.constant 0 : index
    %c0_9 = arith.constant 0 : index
    %6 = vector.load %arg3[%c0_8, %c0_9] : memref<16x1xf32, #tpu.memory_space<vmem>>, vector<16x1xf32>
    %7 = vector.broadcast %6 : vector<16x1xf32> to vector<16x256xf32>
    %8 = arith.addf %5, %7 : vector<16x256xf32>
    %9 = tpu.iota {dimensions = array<i32: 1>} : vector<1x256xi32>
    %c127_i32 = arith.constant 127 : i32
    %10 = vector.broadcast %c127_i32 : i32 to vector<1x256xi32>
    %11 = arith.andi %9, %10 : vector<1x256xi32>
    %c1_i32 = arith.constant 1 : i32
    %12 = vector.broadcast %c1_i32 : i32 to vector<1x256xi32>
    %13 = arith.cmpi sge, %11, %12 : vector<1x256xi32>
    %14 = arith.extui %13 : vector<1x256xi1> to vector<1x256xi32>
    %15 = arith.sitofp %14 : vector<1x256xi32> to vector<1x256xf32>
    %c2_i32 = arith.constant 2 : i32
    %16 = vector.broadcast %c2_i32 : i32 to vector<1x256xi32>
    %17 = arith.cmpi sge, %11, %16 : vector<1x256xi32>
    %18 = arith.extui %17 : vector<1x256xi1> to vector<1x256xi32>
    %19 = arith.sitofp %18 : vector<1x256xi32> to vector<1x256xf32>
    %c127_i32_10 = arith.constant 127 : i32
    %20 = vector.broadcast %c127_i32_10 : i32 to vector<1x256xi32>
    %21 = arith.cmpi slt, %11, %20 : vector<1x256xi32>
    %22 = arith.extui %21 : vector<1x256xi1> to vector<1x256xi32>
    %23 = arith.sitofp %22 : vector<1x256xi32> to vector<1x256xf32>
    %c126_i32 = arith.constant 126 : i32
    %24 = vector.broadcast %c126_i32 : i32 to vector<1x256xi32>
    %25 = arith.cmpi slt, %11, %24 : vector<1x256xi32>
    %26 = arith.extui %25 : vector<1x256xi1> to vector<1x256xi32>
    %27 = arith.sitofp %26 : vector<1x256xi32> to vector<1x256xf32>
    %cst_11 = arith.constant 0.000000e+00 : f32
    %28 = vector.broadcast %cst_11 : f32 to vector<16x256xf32>
    %c1_i32_12 = arith.constant 1 : i32
    %29 = tpu.dynamic_rotate %8 by %c1_i32_12 dim 1 : vector<16x256xf32>, i32 -> vector<16x256xf32>
    %30 = vector.broadcast %15 : vector<1x256xf32> to vector<16x256xf32>
    %31 = arith.mulf %29, %30 : vector<16x256xf32>
    %c255_i32 = arith.constant 255 : i32
    %32 = tpu.dynamic_rotate %8 by %c255_i32 dim 1 : vector<16x256xf32>, i32 -> vector<16x256xf32>
    %33 = vector.broadcast %23 : vector<1x256xf32> to vector<16x256xf32>
    %34 = arith.mulf %32, %33 : vector<16x256xf32>
    %35 = tpu.concatenate %31, %8, %34 in 0 : vector<16x256xf32>, vector<16x256xf32>, vector<16x256xf32> -> vector<48x256xf32>
    %c0_13 = arith.constant 0 : index
    %c0_14 = arith.constant 0 : index
    %c0_15 = arith.constant 0 : index
    %36 = vector.load %arg4[%c0_13, %c0_14, %c0_15] : memref<2x32x48xf32, #tpu.memory_space<vmem>>, vector<1x32x48xf32>
    %37 = vector.shape_cast %36 : vector<1x32x48xf32> to vector<32x48xf32>
    %cst_16 = arith.constant dense<0.000000e+00> : vector<32x256xf32>
    %38 = tpu.matmul %37, %35, %cst_16 {dimension_numbers = #tpu.dot_dimension_numbers<[1], [0], [0], [1], [0, 0, 1, 1], [], []>} : vector<32x48xf32>, vector<48x256xf32>, vector<32x256xf32> -> vector<32x256xf32>
    %c0_17 = arith.constant 0 : index
    %c0_18 = arith.constant 0 : index
    %c0_19 = arith.constant 0 : index
    %39 = vector.load %arg5[%c0_17, %c0_18, %c0_19] : memref<2x32x64xf32, #tpu.memory_space<vmem>>, vector<1x32x64xf32>
    %40 = vector.shape_cast %39 : vector<1x32x64xf32> to vector<32x64xf32>
    %cst_20 = arith.constant dense<0.000000e+00> : vector<32x256xf32>
    %41 = tpu.matmul %40, %0, %cst_20 {dimension_numbers = #tpu.dot_dimension_numbers<[1], [0], [0], [1], [0, 0, 1, 1], [], []>} : vector<32x64xf32>, vector<64x256xf32>, vector<32x256xf32> -> vector<32x256xf32>
    %42 = arith.addf %38, %41 : vector<32x256xf32>
    %c0_21 = arith.constant 0 : index
    %c0_22 = arith.constant 0 : index
    %c0_23 = arith.constant 0 : index
    %43 = vector.load %arg6[%c0_21, %c0_22, %c0_23] : memref<2x32x1xf32, #tpu.memory_space<vmem>>, vector<1x32x1xf32>
    %44 = vector.shape_cast %43 : vector<1x32x1xf32> to vector<32x1xf32>
    %45 = vector.broadcast %44 : vector<32x1xf32> to vector<32x256xf32>
    %46 = arith.addf %42, %45 : vector<32x256xf32>
    %47 = vector.extract_strided_slice %46 {offsets = [0, 0], sizes = [16, 256], strides = [1, 1]} : vector<32x256xf32> to vector<16x256xf32>
    %48 = math.tanh %47 : vector<16x256xf32>
    %49 = vector.extract_strided_slice %46 {offsets = [16, 0], sizes = [16, 256], strides = [1, 1]} : vector<32x256xf32> to vector<16x256xf32>
    %50 = arith.negf %49 : vector<16x256xf32>
    %51 = math.exp %50 : vector<16x256xf32>
    %cst_24 = arith.constant 1.000000e+00 : f32
    %52 = vector.broadcast %cst_24 : f32 to vector<16x256xf32>
    %53 = arith.addf %52, %51 : vector<16x256xf32>
    %54 = arith.divf %52, %53 : vector<16x256xf32>
    %55 = arith.mulf %48, %54 : vector<16x256xf32>
    %c0_25 = arith.constant 0 : index
    %c0_26 = arith.constant 0 : index
    %c0_27 = arith.constant 0 : index
    %56 = vector.load %arg7[%c0_25, %c0_26, %c0_27] : memref<2x32x16xf32, #tpu.memory_space<vmem>>, vector<1x32x16xf32>
    %57 = vector.shape_cast %56 : vector<1x32x16xf32> to vector<32x16xf32>
    %cst_28 = arith.constant dense<0.000000e+00> : vector<32x256xf32>
    %58 = tpu.matmul %57, %55, %cst_28 {dimension_numbers = #tpu.dot_dimension_numbers<[1], [0], [0], [1], [0, 0, 1, 1], [], []>} : vector<32x16xf32>, vector<16x256xf32>, vector<32x256xf32> -> vector<32x256xf32>
    %c0_29 = arith.constant 0 : index
    %c0_30 = arith.constant 0 : index
    %c0_31 = arith.constant 0 : index
    %59 = vector.load %arg8[%c0_29, %c0_30, %c0_31] : memref<2x32x1xf32, #tpu.memory_space<vmem>>, vector<1x32x1xf32>
    %60 = vector.shape_cast %59 : vector<1x32x1xf32> to vector<32x1xf32>
    %61 = vector.broadcast %60 : vector<32x1xf32> to vector<32x256xf32>
    %62 = arith.addf %58, %61 : vector<32x256xf32>
    %63 = vector.extract_strided_slice %62 {offsets = [0, 0], sizes = [16, 256], strides = [1, 1]} : vector<32x256xf32> to vector<16x256xf32>
    %64 = arith.addf %8, %63 : vector<16x256xf32>
    %65 = vector.extract_strided_slice %62 {offsets = [16, 0], sizes = [16, 256], strides = [1, 1]} : vector<32x256xf32> to vector<16x256xf32>
    %66 = arith.addf %28, %65 : vector<16x256xf32>
    %c2_i32_32 = arith.constant 2 : i32
    %67 = tpu.dynamic_rotate %64 by %c2_i32_32 dim 1 : vector<16x256xf32>, i32 -> vector<16x256xf32>
    %68 = vector.broadcast %19 : vector<1x256xf32> to vector<16x256xf32>
    %69 = arith.mulf %67, %68 : vector<16x256xf32>
    %c254_i32 = arith.constant 254 : i32
    %70 = tpu.dynamic_rotate %64 by %c254_i32 dim 1 : vector<16x256xf32>, i32 -> vector<16x256xf32>
    %71 = vector.broadcast %27 : vector<1x256xf32> to vector<16x256xf32>
    %72 = arith.mulf %70, %71 : vector<16x256xf32>
    %73 = tpu.concatenate %69, %64, %72 in 0 : vector<16x256xf32>, vector<16x256xf32>, vector<16x256xf32> -> vector<48x256xf32>
    %c1 = arith.constant 1 : index
    %c0_33 = arith.constant 0 : index
    %c0_34 = arith.constant 0 : index
    %74 = vector.load %arg4[%c1, %c0_33, %c0_34] : memref<2x32x48xf32, #tpu.memory_space<vmem>>, vector<1x32x48xf32>
    %75 = vector.shape_cast %74 : vector<1x32x48xf32> to vector<32x48xf32>
    %cst_35 = arith.constant dense<0.000000e+00> : vector<32x256xf32>
    %76 = tpu.matmul %75, %73, %cst_35 {dimension_numbers = #tpu.dot_dimension_numbers<[1], [0], [0], [1], [0, 0, 1, 1], [], []>} : vector<32x48xf32>, vector<48x256xf32>, vector<32x256xf32> -> vector<32x256xf32>
    %c1_36 = arith.constant 1 : index
    %c0_37 = arith.constant 0 : index
    %c0_38 = arith.constant 0 : index
    %77 = vector.load %arg5[%c1_36, %c0_37, %c0_38] : memref<2x32x64xf32, #tpu.memory_space<vmem>>, vector<1x32x64xf32>
    %78 = vector.shape_cast %77 : vector<1x32x64xf32> to vector<32x64xf32>
    %cst_39 = arith.constant dense<0.000000e+00> : vector<32x256xf32>
    %79 = tpu.matmul %78, %0, %cst_39 {dimension_numbers = #tpu.dot_dimension_numbers<[1], [0], [0], [1], [0, 0, 1, 1], [], []>} : vector<32x64xf32>, vector<64x256xf32>, vector<32x256xf32> -> vector<32x256xf32>
    %80 = arith.addf %76, %79 : vector<32x256xf32>
    %c1_40 = arith.constant 1 : index
    %c0_41 = arith.constant 0 : index
    %c0_42 = arith.constant 0 : index
    %81 = vector.load %arg6[%c1_40, %c0_41, %c0_42] : memref<2x32x1xf32, #tpu.memory_space<vmem>>, vector<1x32x1xf32>
    %82 = vector.shape_cast %81 : vector<1x32x1xf32> to vector<32x1xf32>
    %83 = vector.broadcast %82 : vector<32x1xf32> to vector<32x256xf32>
    %84 = arith.addf %80, %83 : vector<32x256xf32>
    %85 = vector.extract_strided_slice %84 {offsets = [0, 0], sizes = [16, 256], strides = [1, 1]} : vector<32x256xf32> to vector<16x256xf32>
    %86 = math.tanh %85 : vector<16x256xf32>
    %87 = vector.extract_strided_slice %84 {offsets = [16, 0], sizes = [16, 256], strides = [1, 1]} : vector<32x256xf32> to vector<16x256xf32>
    %88 = arith.negf %87 : vector<16x256xf32>
    %89 = math.exp %88 : vector<16x256xf32>
    %cst_43 = arith.constant 1.000000e+00 : f32
    %90 = vector.broadcast %cst_43 : f32 to vector<16x256xf32>
    %91 = arith.addf %90, %89 : vector<16x256xf32>
    %92 = arith.divf %90, %91 : vector<16x256xf32>
    %93 = arith.mulf %86, %92 : vector<16x256xf32>
    %c1_44 = arith.constant 1 : index
    %c0_45 = arith.constant 0 : index
    %c0_46 = arith.constant 0 : index
    %94 = vector.load %arg7[%c1_44, %c0_45, %c0_46] : memref<2x32x16xf32, #tpu.memory_space<vmem>>, vector<1x32x16xf32>
    %95 = vector.shape_cast %94 : vector<1x32x16xf32> to vector<32x16xf32>
    %cst_47 = arith.constant dense<0.000000e+00> : vector<32x256xf32>
    %96 = tpu.matmul %95, %93, %cst_47 {dimension_numbers = #tpu.dot_dimension_numbers<[1], [0], [0], [1], [0, 0, 1, 1], [], []>} : vector<32x16xf32>, vector<16x256xf32>, vector<32x256xf32> -> vector<32x256xf32>
    %c1_48 = arith.constant 1 : index
    %c0_49 = arith.constant 0 : index
    %c0_50 = arith.constant 0 : index
    %97 = vector.load %arg8[%c1_48, %c0_49, %c0_50] : memref<2x32x1xf32, #tpu.memory_space<vmem>>, vector<1x32x1xf32>
    %98 = vector.shape_cast %97 : vector<1x32x1xf32> to vector<32x1xf32>
    %99 = vector.broadcast %98 : vector<32x1xf32> to vector<32x256xf32>
    %100 = arith.addf %96, %99 : vector<32x256xf32>
    %101 = vector.extract_strided_slice %100 {offsets = [16, 0], sizes = [16, 256], strides = [1, 1]} : vector<32x256xf32> to vector<16x256xf32>
    %102 = arith.addf %66, %101 : vector<16x256xf32>
    %c0_51 = arith.constant 0 : index
    %c0_52 = arith.constant 0 : index
    %103 = vector.load %arg9[%c0_51, %c0_52] : memref<16x16xf32, #tpu.memory_space<vmem>>, vector<16x16xf32>
    %cst_53 = arith.constant dense<0.000000e+00> : vector<16x256xf32>
    %104 = tpu.matmul %103, %102, %cst_53 {dimension_numbers = #tpu.dot_dimension_numbers<[1], [0], [0], [1], [0, 0, 1, 1], [], []>} : vector<16x16xf32>, vector<16x256xf32>, vector<16x256xf32> -> vector<16x256xf32>
    %c0_54 = arith.constant 0 : index
    %c0_55 = arith.constant 0 : index
    %105 = vector.load %arg10[%c0_54, %c0_55] : memref<16x1xf32, #tpu.memory_space<vmem>>, vector<16x1xf32>
    %106 = vector.broadcast %105 : vector<16x1xf32> to vector<16x256xf32>
    %107 = arith.addf %104, %106 : vector<16x256xf32>
    %108 = vector.extract_strided_slice %107 {offsets = [0, 0], sizes = [8, 256], strides = [1, 1]} : vector<16x256xf32> to vector<8x256xf32>
    %109 = vector.extract_strided_slice %107 {offsets = [8, 0], sizes = [8, 256], strides = [1, 1]} : vector<16x256xf32> to vector<8x256xf32>
    %110 = math.exp %108 : vector<8x256xf32>
    %111 = arith.mulf %110, %3 : vector<8x256xf32>
    %112 = arith.addf %111, %109 : vector<8x256xf32>
    %c0_56 = arith.constant 0 : index
    %c0_57 = arith.constant 0 : index
    %113 = vector.load %arg13[%c0_56, %c0_57] : memref<8x256xf32, #tpu.memory_space<vmem>>, vector<8x256xf32>
    tpu.vector_store %arg13[%c0_56, %c0_57], %112 {strides = array<i32>} : memref<8x256xf32, #tpu.memory_space<vmem>>, vector<8x256xf32>,
    %c0_58 = arith.constant 0 : index
    %c0_59 = arith.constant 0 : index
    %114 = vector.load %arg14[%c0_58, %c0_59] : memref<8x256xf32, #tpu.memory_space<vmem>>, vector<8x256xf32>
    tpu.vector_store %arg14[%c0_58, %c0_59], %108 {strides = array<i32>} : memref<8x256xf32, #tpu.memory_space<vmem>>, vector<8x256xf32>,
    return
  }
  func.func @transform_0(%arg0: i32) -> (i32, i32) {
    %c0_i32 = arith.constant 0 : i32
    %c0_i32_0 = arith.constant 0 : i32
    %c0_i32_1 = arith.constant 0 : i32
    return %c0_i32, %c0_i32_0 : i32, i32
  }
  func.func @transform_1(%arg0: i32) -> (i32, i32) {
    %c0_i32 = arith.constant 0 : i32
    %c0_i32_0 = arith.constant 0 : i32
    %c0_i32_1 = arith.constant 0 : i32
    return %c0_i32, %c0_i32_0 : i32, i32
  }
  func.func @transform_2(%arg0: i32) -> (i32, i32) {
    %c0_i32 = arith.constant 0 : i32
    %c0_i32_0 = arith.constant 0 : i32
    %c0_i32_1 = arith.constant 0 : i32
    return %c0_i32, %c0_i32_0 : i32, i32
  }
  func.func @transform_3(%arg0: i32) -> (i32, i32, i32) {
    %c0_i32 = arith.constant 0 : i32
    %c0_i32_0 = arith.constant 0 : i32
    %c0_i32_1 = arith.constant 0 : i32
    %c0_i32_2 = arith.constant 0 : i32
    return %c0_i32, %c0_i32_0, %c0_i32_1 : i32, i32, i32
  }
  func.func @transform_4(%arg0: i32) -> (i32, i32, i32) {
    %c0_i32 = arith.constant 0 : i32
    %c0_i32_0 = arith.constant 0 : i32
    %c0_i32_1 = arith.constant 0 : i32
    %c0_i32_2 = arith.constant 0 : i32
    return %c0_i32, %c0_i32_0, %c0_i32_1 : i32, i32, i32
  }
  func.func @transform_5(%arg0: i32) -> (i32, i32, i32) {
    %c0_i32 = arith.constant 0 : i32
    %c0_i32_0 = arith.constant 0 : i32
    %c0_i32_1 = arith.constant 0 : i32
    %c0_i32_2 = arith.constant 0 : i32
    return %c0_i32, %c0_i32_0, %c0_i32_1 : i32, i32, i32
  }
  func.func @transform_6(%arg0: i32) -> (i32, i32, i32) {
    %c0_i32 = arith.constant 0 : i32
    %c0_i32_0 = arith.constant 0 : i32
    %c0_i32_1 = arith.constant 0 : i32
    %c0_i32_2 = arith.constant 0 : i32
    return %c0_i32, %c0_i32_0, %c0_i32_1 : i32, i32, i32
  }
  func.func @transform_7(%arg0: i32) -> (i32, i32, i32) {
    %c0_i32 = arith.constant 0 : i32
    %c0_i32_0 = arith.constant 0 : i32
    %c0_i32_1 = arith.constant 0 : i32
    %c0_i32_2 = arith.constant 0 : i32
    return %c0_i32, %c0_i32_0, %c0_i32_1 : i32, i32, i32
  }
  func.func @transform_8(%arg0: i32) -> (i32, i32) {
    %c0_i32 = arith.constant 0 : i32
    %c0_i32_0 = arith.constant 0 : i32
    %c0_i32_1 = arith.constant 0 : i32
    return %c0_i32, %c0_i32_0 : i32, i32
  }
  func.func @transform_9(%arg0: i32) -> (i32, i32) {
    %c0_i32 = arith.constant 0 : i32
    %c0_i32_0 = arith.constant 0 : i32
    %c0_i32_1 = arith.constant 0 : i32
    return %c0_i32, %c0_i32_0 : i32, i32
  }
  func.func @transform_10(%arg0: i32) -> (i32, i32) {
    %c0_i32 = arith.constant 0 : i32
    %c0_i32_0 = arith.constant 0 : i32
    return %c0_i32, %arg0 : i32, i32
  }
  func.func @transform_11(%arg0: i32) -> (i32, i32) {
    %c0_i32 = arith.constant 0 : i32
    %c0_i32_0 = arith.constant 0 : i32
    return %c0_i32, %arg0 : i32, i32
  }
  func.func @transform_12(%arg0: i32) -> (i32, i32) {
    %c0_i32 = arith.constant 0 : i32
    %c0_i32_0 = arith.constant 0 : i32
    return %c0_i32, %arg0 : i32, i32
  }
  func.func @transform_13(%arg0: i32) -> (i32, i32) {
    %c0_i32 = arith.constant 0 : i32
    %c0_i32_0 = arith.constant 0 : i32
    return %c0_i32, %arg0 : i32, i32
  }
}

</mosaic_0001>

<bundles_post_ra>
// kernel: waveglow_forward.6
= control target key start
LH: loop header
LB: loop body
LE: loop exit
PB: predicated region body
PF: predicated region fallthrough
CT: control target
= control target key end

     0   :  { %vm66_vm0 = vcmask 1045504   ;;  %v1404_v2 = vmov 0.0   ;;  %vm62_vm1 = vcmask 48128   ;;  %v1405_v4 = vmov 0   ;;  %s1406_s15 = smov 127   ;;  %s1407_s22 = smov 1   ;;  %s1866_s11 = inlined_call_operand.vmem [shape: f32[6,256], index: 11, kind: input, shape index: {}]   ;;  %s1867_s1 = inlined_call_operand.vmem [shape: f32[16,6], index: 1, kind: input, shape index: {}]   ;;  %s1868_s2 = inlined_call_operand.vmem [shape: f32[16,1], index: 2, kind: input, shape index: {}]   ;;  %s1869_s10 = inlined_call_operand.vmem [shape: f32[64,256], index: 10, kind: input, shape index: {}]   ;;  %s1870_s0 = inlined_call_operand.vmem [shape: f32[6,6], index: 0, kind: input, shape index: {}]   ;;  %s1871_s5 = inlined_call_operand.vmem [shape: f32[2,32,1], index: 5, kind: input, shape index: {}]   ;;  %s1872_s4 = inlined_call_operand.vmem [shape: f32[2,32,64], index: 4, kind: input, shape index: {}]   ;;  %s1873_s7 = inlined_call_operand.vmem [shape: f32[2,32,1], index: 7, kind: input, shape index: {}]   ;;  %s1874_s3 = inlined_call_operand.vmem [shape: f32[2,32,48], index: 3, kind: input, shape index: {}]   ;;  %s1875_s6 = inlined_call_operand.vmem [shape: f32[2,32,16], index: 6, kind: input, shape index: {}]   ;;  %s1876_s9 = inlined_call_operand.vmem [shape: f32[16,1], index: 9, kind: input, shape index: {}]   ;;  %s1877_s8 = inlined_call_operand.vmem [shape: f32[16,16], index: 8, kind: input, shape index: {}]   ;;  %s1878_s13 = inlined_call_operand.vmem [shape: f32[6,256], index: 13, kind: output, shape index: {1}]   ;;  %s1879_s12 = inlined_call_operand.vmem [shape: f32[6,256], index: 12, kind: output, shape index: {0}]  }
   0x1   :  { %v60_v0 = vld [vmem:[%s1866_s11 + $0x8] sm:$0x3f]  ;;  %v59_v1 = vld [vmem:[%s1866_s11] sm:$0x3f]  ;;  %228 = vmatprep.mubr.f32.mxu1 %v1404_v2  ;;  %1350 = vset.pattern.permute.xlu0 %v1405_v4  ;;  %v58_v9 = vld [vmem:[%s1869_s10 + $0x78] sm:$0xff]  ;;  %vm312_vm2 = vcmask 523264   ;;  %v241_v45 = vlaneseq }
   0x2   :  { %v144_v3 = vld [vmem:[%s1867_s1] sm:$0xff]  ;;  %1278 = vmatprep.subr.msk.mxu1 %vm66_vm0, %v60_v0  ;;  %v147_v5 = vld [vmem:[%s1868_s2 + $0x8] sm:$0xff]  ;;  %1275 = vmatprep.subr.msk.mxu0 %vm66_vm0, %v60_v0  ;;  %v57_v11 = vld [vmem:[%s1869_s10 + $0x70] sm:$0xff]  ;;  %vm414_vm8 = vcmask 392192   ;;  %vm608_vm9 = vcmask 130048   ;;  %s1408_s25 = smov 126  }
   0x3   :  { %1279 = vmatpush1.msk.msra.mxu1 %vm66_vm0, %v59_v1  ;;  %155 = vperm.xlu0 %1350, %v147_v5   ;;  %v146_v6 = vld [vmem:[%s1868_s2] sm:$0xff]  ;;  %v145_v7 = vld [vmem:[%s1867_s1 + $0x8] sm:$0xff]  ;;  %v54_v16 = vld [vmem:[%s1869_s10 + $0x58] sm:$0xff]  ;;  %v1631_v46 = vand.u32 127, %v241_v45  ;;  %s1409_s28 = smov 2  }
   0x4   :  { %1280 = vmatmul.mubr.msk.f32.vlgmr.msra.gmra.mxu1 %vm62_vm1, %v144_v3  ;;  %1276 = vmatpush1.msk.msra.mxu0 %vm66_vm0, %v59_v1  ;;  %v61_v10 = vld [vmem:[%s1870_s0] sm:$0x3f]  ;;  %v56_v13 = vld [vmem:[%s1869_s10 + $0x68] sm:$0xff]  ;;  %v1536_v18 = vld [vmem:[%s1869_s10 + $0x50] sm:$0xff] }
   0x5   :  { %234 = vmatprep.mubr.f32.mxu1 %v1404_v2  ;;  %137 = vmatprep.mubr.f32.mxu0 %v1404_v2  ;;  %v1524_v14 = vld [vmem:[%s1869_s10 + $0x60] sm:$0xff]  ;;  %v52_v20 = vld [vmem:[%s1869_s10 + $0x48] sm:$0xff]  ;;  %v50_v23 = vld [vmem:[%s1869_s10 + $0x38] sm:$0xff]  ;;  %v243_v47 = vadd.s32 128, %v1631_v46  ;;  %vm258_vm3 = vcmp.lt.s32.totalorder %v1631_v46, 127  ;;  %vm278_vm6 = vcmp.lt.s32.totalorder %v1631_v46, 1 }
   0x6   :  { %1351 = vset.pattern.permute.xlu1 %v1405_v4  ;;  %341 = vmatprep.subr.mxu0 %v58_v9  ;;  %v51_v21 = vld [vmem:[%s1869_s10 + $0x40] sm:$0xff]  ;;  %v49_v25 = vld [vmem:[%s1869_s10 + $0x30] sm:$0xff]  ;;  %v48_v27 = vld [vmem:[%s1869_s10 + $0x28] sm:$0xff]  ;;  %v1286_v50 = vsel %vm258_vm3, 1.0, %v1404_v2  ;;  %vm246_vm7 = vcmp.ge.s32.totalorder %v1631_v46, 1  ;;  %vm264_vm10 = vcmp.lt.s32.totalorder %v1631_v46, 126 }
   0x7   :  { %150 = vperm.xlu0 %1350, %v146_v6   ;;  %1277 = vmatmul.mubr.msk.f32.vlgmr.msra.gmra.mxu0 %vm62_vm1, %v61_v10  ;;  %v47_v28 = vld [vmem:[%s1869_s10 + $0x20] sm:$0xff]  ;;  %v46_v30 = vld [vmem:[%s1869_s10 + $0x18] sm:$0xff]  ;;  %v45_v31 = vld [vmem:[%s1869_s10 + $0x10] sm:$0xff]  ;;  %v1634_v48 = vand.u32 127, %v243_v47  ;;  %v1282_v4 = vsel %vm246_vm7, 1.0, %v1404_v2  ;;  %vm726_vm13 = vcmp.lt.s32.totalorder %v1631_v46, 2 }
   0x8   :  { %1281 = vmatmul.mubr.msk.f32.gmra.mxu1 %vm62_vm1, %v145_v7  ;;  %342 = vmatpush1.msra.mxu0 %v57_v11  ;;  %v44_v32 = vld [vmem:[%s1869_s10 + $0x8] sm:$0xff]  ;;  %v519_v33 = vld [vmem:[%s1871_s5 + $0x18] sm:$0xff]  ;;  %v43_v35 = vld [vmem:[%s1869_s10] sm:$0xff]  ;;  %vm252_vm14 = vcmp.ge.s32.totalorder %v1631_v46, 2 }
   0x9   :  { %491 = vmatprep.mubr.f32.mxu1 %v1404_v2  ;;  %389 = vmatprep.mubr.f32.mxu0 %v1404_v2  ;;  %v308_v36 = vld [vmem:[%s1872_s4] sm:$0xff]  ;;  %v517_v37 = vld [vmem:[%s1871_s5 + $0x8] sm:$0xff]  ;;  %v310_v40 = vld [vmem:[%s1872_s4 + $0x10] sm:$0xff]  ;;  %vm259_vm4 = vcmp.lt.s32.totalorder %v1634_v48, 127  ;;  %vm247_vm5 = vcmp.ge.s32.totalorder %v1634_v48, 1  ;;  %vm265_vm11 = vcmp.lt.s32.totalorder %v1634_v48, 126 }
   0xa   :  { %343 = vmatprep.subr.mxu0 %v56_v13  ;;  %v309_v38 = vld [vmem:[%s1872_s4 + $0x8] sm:$0xff]  ;;  %v311_v41 = vld [vmem:[%s1872_s4 + $0x18] sm:$0xff]  ;;  %v518_v42 = vld [vmem:[%s1871_s5 + $0x10] sm:$0xff]  ;;  %v1287_v51 = vsel %vm259_vm4, 1.0, %v1404_v2  ;;  %v1283_v1 = vsel %vm247_vm5, 1.0, %v1404_v2  ;;  %vm253_vm12 = vcmp.ge.s32.totalorder %v1634_v48, 2 }
   0xb   :  { %344 = vmatpush1.msra.mxu0 %v1524_v14  ;;  %v585_v39 = vld [vmem:[%s1873_s7 + $0x8] sm:$0xff]  ;;  %v516_v43 = vld [vmem:[%s1871_s5] sm:$0xff] }
   0xc   :  { %345 = vmatprep.subr.mxu0 %v54_v16  ;;  %v584_v44 = vld [vmem:[%s1873_s7] sm:$0xff]  ;;  %v1307_v46 = vld [vmem:[%s1874_s3 + $0x28] sm:$0xff] }
   0xd   :  { %346 = vmatpush1.msra.mxu0 %v1536_v18 }
   0xe   :  { %347 = vmatprep.subr.mxu0 %v52_v20 }
   0xf   :  { %348 = vmatpush1.msra.mxu0 %v51_v21 }
  0x10   :  { %349 = vmatprep.subr.mxu0 %v50_v23 }
  0x11   :  { %350 = vmatpush1.msra.mxu0 %v49_v25 }
  0x12   :  { %351 = vmatprep.subr.mxu0 %v48_v27 }
  0x13   :  { %352 = vmatpush1.msra.mxu0 %v47_v28 }
  0x14   :  { %353 = vmatprep.subr.mxu0 %v46_v30 }
  0x15   :  { %354 = vmatpush1.msra.mxu0 %v45_v31 }
  0x16   :  { %355 = vmatprep.subr.mxu0 %v44_v32 }
  0x17   :  { %356 = vmatpush1.msra.mxu0 %v43_v35 }
  0x18   :  { %1290 = vmatmul.mubr.msk.f32.vlgmr.msra.gmra.mxu0 %vm312_vm2, %v308_v36  ;;  %790 = vmatprep.subr.mxu0 %v58_v9 }
  0x19   :  { %395 = vmatprep.mubr.f32.mxu0 %v1404_v2  ;;  %791 = vmatpush1.msra.mxu0 %v57_v11 }
  0x1a   :  { %792 = vmatprep.subr.mxu0 %v56_v13 }
  0x1b   :  { %793 = vmatpush1.msra.mxu0 %v1524_v14  ;;  %v304_v14 = vld [vmem:[%s1874_s3] sm:$0xff] }
  0x1c   :  { %1291 = vmatmul.mubr.msk.f32.gmra.mxu0 %vm312_vm2, %v309_v38  ;;  %794 = vmatprep.subr.mxu0 %v54_v16  ;;  %v306_v16 = vld [vmem:[%s1874_s3 + $0x10] sm:$0xff] }
  0x1d   :  { %401 = vmatprep.mubr.f32.mxu0 %v1404_v2  ;;  %795 = vmatpush1.msra.mxu0 %v1536_v18  ;;  %v307_v18 = vld [vmem:[%s1874_s3 + $0x18] sm:$0xff] }
  0x1e   :  { %796 = vmatprep.subr.mxu0 %v52_v20 }
  0x1f   :  { %797 = vmatpush1.msra.mxu0 %v51_v21 }
  0x20   :  { %1292 = vmatmul.mubr.msk.f32.gmra.mxu0 %vm312_vm2, %v310_v40  ;;  %798 = vmatprep.subr.mxu0 %v50_v23 }
  0x21   :  { %407 = vmatprep.mubr.f32.mxu0 %v1404_v2  ;;  %799 = vmatpush1.msra.mxu0 %v49_v25 }
  0x22   :  { %800 = vmatprep.subr.mxu0 %v48_v27 }
  0x23   :  { %801 = vmatpush1.msra.mxu0 %v47_v28 }
  0x24   :  { %1293 = vmatmul.mubr.msk.f32.gmra.mxu0 %vm312_vm2, %v311_v41  ;;  %802 = vmatprep.subr.mxu0 %v46_v30 }
  0x25   :  { %838 = vmatprep.mubr.f32.mxu0 %v1404_v2  ;;  %803 = vmatpush1.msra.mxu0 %v45_v31 }
  0x26   :  { %804 = vmatprep.subr.mxu0 %v44_v32 }
  0x27   :  { %805 = vmatpush1.msra.mxu0 %v43_v35 }
  0x7e   :  { %v156_v8 = vpop.permute.xlu0 %155 }
  0x82   :  { %v151_v12 = vpop.permute.xlu0 %150 }
  0xc4   :  { %v230_v15 = vpop.f32.mrf.mxu1 }
  0xc5   :  { %v1530_v17 = vadd.f32 %v230_v15, %v151_v12  ;;  %v305_v15 = vld [vmem:[%s1874_s3 + $0x8] sm:$0xff] }
  0xc6   :  { %v232_v19 = vpop.f32.mrf.mxu1 }
  0xc7   :  { %287 = vrot.lane.b32.xlu0 %v1530_v17, %s1406_s15  ;;  %v1583_v34 = vadd.f32 %v232_v19, %v151_v12  ;;  %v1677_v19 = vpop.f32.mrf.mxu0 }
  0xc8   :  { %v236_v22 = vpop.f32.mrf.mxu1 }
  0xc9   :  { %v1550_v24 = vadd.f32 %v236_v22, %v156_v8  ;;  %v1679_v20 = vpop.f32.mrf.mxu0 }
  0xca   :  { %v238_v26 = vpop.f32.mrf.mxu1 }
  0xcb   :  { %289 = vrot.lane.b32.xlu1 %v1550_v24, %s1406_s15  ;;  %272 = vrot.lane.b32.xlu0 %v1550_v24, %s1407_s22  ;;  %v1565_v29 = vadd.f32 %v238_v26, %v156_v8 }
  0xcf   :  { %293 = vrot.lane.b32.xlu1 %v1565_v29, %s1406_s15  ;;  %270 = vrot.lane.b32.xlu0 %v1530_v17, %s1407_s22 }
  0xd3   :  { %291 = vrot.lane.b32.xlu1 %v1583_v34, %s1406_s15  ;;  %537 = vperm.xlu0 %1350, %v519_v33  }
  0xd7   :  { %276 = vrot.lane.b32.xlu1 %v1565_v29, %s1407_s22  ;;  %527 = vperm.xlu0 %1350, %v517_v37  }
  0xd8   :  { %v391_v21 = vpop.f32.mrf.mxu0 }
  0xda   :  { %v393_v22 = vpop.f32.mrf.mxu0 }
  0xdb   :  { %274 = vrot.lane.b32.xlu1 %v1583_v34, %s1407_s22  ;;  %595 = vperm.xlu0 %1350, %v585_v39  }
  0xdc   :  { %v397_v23 = vpop.f32.mrf.mxu0 }
  0xde   :  { %v399_v25 = vpop.f32.mrf.mxu0 }
  0xdf   :  { %532 = vperm.xlu1 %1351, %v518_v42  }
  0xe0   :  { %v403_v28 = vpop.f32.mrf.mxu0 }
  0xe2   :  { %v405_v32 = vpop.f32.mrf.mxu0 }
  0xe3   :  { %522 = vperm.xlu1 %1351, %v516_v43  }
  0xe4   :  { %v409_v37 = vpop.f32.mrf.mxu0 }
  0xe6   :  { %v411_v47 = vpop.f32.mrf.mxu0 }
  0xe7   :  { %590 = vperm.xlu1 %1351, %v584_v44  }
 0x139   :  { %v288_v52 = vpop.permute.xlu0 %287 }
 0x13d   :  { %v290_v49 = vpop.permute.xlu1 %289  ;;  %v273_v61 = vpop.permute.xlu0 %272 }
 0x141   :  { %v294_v53 = vpop.permute.xlu1 %293  ;;  %v271_v6 = vpop.permute.xlu0 %270 }
 0x142   :  { %v297_v54 = vsel %vm258_vm3, %v290_v49, %v294_v53  ;;  %v299_v55 = vsel %vm258_vm3, %v294_v53, %v290_v49 }
 0x143   :  { %v302_v56 = vmul.f32 %v1286_v50, %v297_v54  ;;  %v303_v57 = vmul.f32 %v1287_v51, %v299_v55 }
 0x145   :  { %447 = vmatprep.subr.mxu1 %v303_v57  ;;  %v292_v58 = vpop.permute.xlu1 %291 }
 0x146   :  { %v296_v59 = vsel %vm258_vm3, %v288_v52, %v292_v58  ;;  %v298_v60 = vsel %vm258_vm3, %v292_v58, %v288_v52  ;;  %448 = vmatpush1.msra.mxu1 %v302_v56 }
 0x147   :  { %v300_v62 = vmul.f32 %v1286_v50, %v296_v59  ;;  %v301_v63 = vmul.f32 %v1287_v51, %v298_v60 }
 0x149   :  { %v277_v0 = vpop.permute.xlu1 %276  ;;  %449 = vmatprep.subr.mxu1 %v301_v63 }
 0x14a   :  { %v280_v3 = vsel %vm278_vm6, %v273_v61, %v277_v0  ;;  %450 = vmatpush1.msra.mxu1 %v300_v62  ;;  %v282_v5 = vsel %vm278_vm6, %v277_v0, %v273_v61 }
 0x14b   :  { %451 = vmatprep.subr.mxu1 %v1565_v29  ;;  %v286_v7 = vmul.f32 %v1283_v1, %v280_v3  ;;  %v285_v9 = vmul.f32 %v1282_v4, %v282_v5 }
 0x14c   :  { %452 = vmatpush1.msra.mxu1 %v1550_v24 }
 0x14d   :  { %v275_v8 = vpop.permute.xlu1 %274  ;;  %453 = vmatprep.subr.mxu1 %v1583_v34 }
 0x14e   :  { %v279_v10 = vsel %vm278_vm6, %v271_v6, %v275_v8  ;;  %v281_v11 = vsel %vm278_vm6, %v275_v8, %v271_v6  ;;  %454 = vmatpush1.msra.mxu1 %v1530_v17  ;;  %v538_v42 = vpop.permute.xlu0 %537 }
 0x14f   :  { %v283_v12 = vmul.f32 %v1282_v4, %v281_v11  ;;  %v284_v13 = vmul.f32 %v1283_v1, %v279_v10  ;;  %455 = vmatprep.subr.mxu1 %v286_v7 }
 0x150   :  { %456 = vmatpush1.msra.mxu1 %v285_v9 }
 0x151   :  { %457 = vmatprep.subr.mxu1 %v284_v13 }
 0x152   :  { %458 = vmatpush1.msra.mxu1 %v283_v12  ;;  %v528_v58 = vpop.permute.xlu0 %527 }
 0x153   :  { %1294 = vmatmul.mubr.msk.f32.vlgmr.msra.gmra.mxu1 %vm414_vm8, %v304_v14 }
 0x154   :  { %497 = vmatprep.mubr.f32.mxu1 %v1404_v2 }
 0x157   :  { %1295 = vmatmul.mubr.msk.f32.gmra.mxu1 %vm414_vm8, %v305_v15 }
 0x158   :  { %503 = vmatprep.mubr.f32.mxu1 %v1404_v2 }
 0x15a   :  { %v533_v35 = vpop.permute.xlu1 %532 }
 0x15b   :  { %1296 = vmatmul.mubr.msk.f32.gmra.mxu1 %vm414_vm8, %v306_v16 }
 0x15c   :  { %509 = vmatprep.mubr.f32.mxu1 %v1404_v2 }
 0x15e   :  { %v523_v4 = vpop.permute.xlu1 %522 }
 0x15f   :  { %1297 = vmatmul.mubr.msk.f32.gmra.mxu1 %vm414_vm8, %v307_v18 }
 0x160   :  { %685 = vmatprep.mubr.f32.mxu1 %v1404_v2 }
 0x213   :  { %v493_v26 = vpop.f32.mrf.mxu1 }
 0x214   :  { %v494_v3 = vadd.f32 %v493_v26, %v391_v21 }
 0x215   :  { %v495_v27 = vpop.f32.mrf.mxu1 }
 0x216   :  { %v496_v63 = vadd.f32 %v495_v27, %v393_v22  ;;  %v540_v10 = vadd.f32 %v523_v4, %v494_v3  ;;  %v580_v27 = vld [vmem:[%s1875_s6] sm:$0xff] }
 0x217   :  { %v499_v30 = vpop.f32.mrf.mxu1 }
 0x218   :  { %v500_v56 = vadd.f32 %v499_v30, %v397_v23  ;;  %v541_v8 = vadd.f32 %v523_v4, %v496_v63  ;;  %v582_v30 = vld [vmem:[%s1875_s6 + $0x10] sm:$0xff] }
 0x219   :  { %v501_v31 = vpop.f32.mrf.mxu1 }
 0x21a   :  { %v502_v57 = vadd.f32 %v501_v31, %v399_v25  ;;  %v542_v59 = vadd.f32 %v528_v58, %v500_v56  ;;  %v583_v31 = vld [vmem:[%s1875_s6 + $0x18] sm:$0xff]  ;;  %v1336_v56 = vld [vmem:[%s1873_s7 + $0x30] sm:$0xff] }
 0x21b   :  { %v505_v33 = vpop.f32.mrf.mxu1 }
 0x21c   :  { %v506_v36 = vadd.f32 %v505_v33, %v403_v28  ;;  %v543_v61 = vadd.f32 %v528_v58, %v502_v57  ;;  %v581_v28 = vld [vmem:[%s1875_s6 + $0x8] sm:$0xff]  ;;  %v1160_v57 = vld [vmem:[%s1876_s9] sm:$0xff] }
 0x21d   :  { %v507_v38 = vpop.f32.mrf.mxu1  ;;  %v1161_v58 = vld [vmem:[%s1876_s9 + $0x8] sm:$0xff] }
 0x21e   :  { %v544_v39 = vadd.f32 %v533_v35, %v506_v36  ;;  %v508_v40 = vadd.f32 %v507_v38, %v405_v32  ;;  %v591_v38 = vpop.permute.xlu1 %590 }
 0x21f   :  { %v511_v41 = vpop.f32.mrf.mxu1 }
 0x220   :  { %v545_v43 = vadd.f32 %v533_v35, %v508_v40  ;;  %v512_v44 = vadd.f32 %v511_v41, %v409_v37  ;;  %v1298_v45 = vmul.f32 -1.442695, %v544_v39  ;;  %v596_v35 = vpop.permute.xlu0 %595 }
 0x221   :  { %v513_v49 = vpop.f32.mrf.mxu1 }
 0x222   :  { %v1299_v50 = vmul.f32 -1.442695, %v545_v43  ;;  %v546_v51 = vadd.f32 %v538_v42, %v512_v44  ;;  %v514_v52 = vadd.f32 %v513_v49, %v411_v47  ;;  %v1310_v47 = vld [vmem:[%s1872_s4 + $0x20] sm:$0xff]  ;;  %v1324_v49 = vld [vmem:[%s1871_s5 + $0x30] sm:$0xff] }
 0x223   :  { %1314 = vmatmul.mubr.msk.f32.vlgmr.msra.gmra.mxu0 %vm312_vm2, %v1310_v47 }
 0x224   :  { %1352 = vpow2.f32 %v1299_v50  ;;  %v1300_v53 = vmul.f32 -1.442695, %v546_v51  ;;  %v547_v54 = vadd.f32 %v538_v42, %v514_v52  ;;  %844 = vmatprep.mubr.f32.mxu0 %v1404_v2  ;;  %v1313_v50 = vld [vmem:[%s1872_s4 + $0x38] sm:$0xff]  ;;  %v1323_v51 = vld [vmem:[%s1871_s5 + $0x28] sm:$0xff]  ;;  %v1322_v52 = vld [vmem:[%s1871_s5 + $0x20] sm:$0xff] }
 0x225   :  { %1354 = vpow2.f32 %v1298_v45 }
 0x226   :  { %1356 = vpow2.f32 %v1300_v53  ;;  %v1301_v55 = vmul.f32 -1.442695, %v547_v54  ;;  %v587_v53 = vld [vmem:[%s1873_s7 + $0x18] sm:$0xff] }
 0x227   :  { %v1337_v54 = vld [vmem:[%s1873_s7 + $0x38] sm:$0xff] }
 0x228   :  { %1358 = vpow2.f32 %v1301_v55  ;;  %v586_v55 = vld [vmem:[%s1873_s7 + $0x10] sm:$0xff] }
 0x229   :  { %1360 = vtanh.f32 %v542_v59 }
 0x22a   :  { %1362 = vtanh.f32 %v543_v61  ;;  %v1289_v61 = vsel %vm265_vm11, 1.0, %v1404_v2 }
 0x231   :  { %v1353_v60 = vpop.eup %1352 }
 0x232   :  { %v1355_v62 = vpop.eup %1354  ;;  %v565_v0 = vadd.f32 1.0, %v1353_v60  ;;  %v1288_v60 = vsel %vm264_vm10, 1.0, %v1404_v2 }
 0x233   :  { %v1357_v1 = vpop.eup %1356  ;;  %v564_v7 = vadd.f32 1.0, %v1355_v62 }
 0x234   :  { %v566_v5 = vadd.f32 1.0, %v1357_v1  ;;  %1364 = vrcp.f32 %v565_v0 }
 0x235   :  { %v1359_v6 = vpop.eup %1358 }
 0x236   :  { %v567_v9 = vadd.f32 1.0, %v1359_v6  ;;  %1366 = vrcp.f32 %v566_v5  ;;  %v1361_v11 = vpop.eup %1360 }
 0x237   :  { %v1363_v12 = vpop.eup %1362 }
 0x238   :  { %1368 = vrcp.f32 %v567_v9 }
 0x239   :  { %1370 = vrcp.f32 %v564_v7 }
 0x23a   :  { %1372 = vtanh.f32 %v541_v8 }
 0x23b   :  { %1374 = vtanh.f32 %v540_v10 }
 0x241   :  { %v1365_v13 = vpop.eup %1364 }
 0x243   :  { %v1367_v14 = vpop.eup %1366 }
 0x244   :  { %v578_v22 = vmul.f32 %v1367_v14, %v1361_v11  ;;  %v1284_v14 = vsel %vm252_vm14, 1.0, %v1404_v2 }
 0x245   :  { %v1369_v15 = vpop.eup %1368 }
 0x246   :  { %v1371_v16 = vpop.eup %1370  ;;  %v579_v18 = vmul.f32 %v1369_v15, %v1363_v12  ;;  %v1285_v12 = vsel %vm253_vm12, 1.0, %v1404_v2 }
 0x247   :  { %v1373_v21 = vpop.eup %1372 }
 0x248   :  { %v1375_v23 = vpop.eup %1374  ;;  %649 = vmatprep.subr.mxu1 %v579_v18  ;;  %v577_v25 = vmul.f32 %v1373_v21, %v1365_v13 }
 0x249   :  { %650 = vmatpush1.msra.mxu1 %v578_v22  ;;  %v576_v26 = vmul.f32 %v1375_v23, %v1371_v16 }
 0x24a   :  { %651 = vmatprep.subr.mxu1 %v577_v25 }
 0x24b   :  { %652 = vmatpush1.msra.mxu1 %v576_v26 }
 0x24c   :  { %1302 = vmatmul.mubr.msk.f32.vlgmr.msra.gmra.mxu1 %vm608_vm9, %v580_v27  ;;  %v1306_v27 = vld [vmem:[%s1874_s3 + $0x20] sm:$0xff] }
 0x24d   :  { %691 = vmatprep.mubr.f32.mxu1 %v1404_v2 }
 0x250   :  { %1303 = vmatmul.mubr.msk.f32.gmra.mxu1 %vm608_vm9, %v581_v28  ;;  %v1308_v28 = vld [vmem:[%s1874_s3 + $0x30] sm:$0xff] }
 0x251   :  { %697 = vmatprep.mubr.f32.mxu1 %v1404_v2 }
 0x254   :  { %1304 = vmatmul.mubr.msk.f32.gmra.mxu1 %vm608_vm9, %v582_v30  ;;  %v1309_v30 = vld [vmem:[%s1874_s3 + $0x38] sm:$0xff] }
 0x255   :  { %703 = vmatprep.mubr.f32.mxu1 %v1404_v2 }
 0x258   :  { %1305 = vmatmul.mubr.msk.f32.gmra.mxu1 %vm608_vm9, %v583_v31 }
 0x259   :  { %939 = vmatprep.mubr.f32.mxu1 %v1404_v2 }
 0x30c   :  { %v687_v32 = vpop.f32.mrf.mxu1 }
 0x30d   :  { %v688_v40 = vadd.f32 %v687_v32, %v591_v38  ;;  %v840_v32 = vpop.f32.mrf.mxu0 }
 0x30e   :  { %v689_v33 = vpop.f32.mrf.mxu1 }
 0x30f   :  { %v690_v43 = vadd.f32 %v689_v33, %v591_v38  ;;  %v1709_v45 = vadd.f32 %v688_v40, %v1530_v17  ;;  %v1311_v17 = vld [vmem:[%s1872_s4 + $0x28] sm:$0xff] }
 0x310   :  { %v693_v36 = vpop.f32.mrf.mxu1  ;;  %1315 = vmatmul.mubr.msk.f32.gmra.mxu0 %vm312_vm2, %v1311_v17 }
 0x311   :  { %v694_v37 = vadd.f32 %v693_v36, %v596_v35  ;;  %850 = vmatprep.mubr.f32.mxu0 %v1404_v2 }
 0x312   :  { %v695_v39 = vpop.f32.mrf.mxu1 }
 0x313   :  { %v1702_v41 = vadd.f32 %v694_v37, %v1550_v24  ;;  %v696_v42 = vadd.f32 %v695_v39, %v596_v35  ;;  %v1716_v24 = vadd.f32 %v690_v43, %v1583_v34  ;;  %v1325_v34 = vld [vmem:[%s1871_s5 + $0x38] sm:$0xff]  ;;  %v842_v35 = vpop.f32.mrf.mxu0 }
 0x314   :  { %v1812_v31 = vpop.f32.mrf.mxu1 }
 0x315   :  { %v1705_v44 = vadd.f32 %v696_v42, %v1565_v29  ;;  %737 = vrot.lane.b32.xlu0 %v1702_v41, %s1408_s25  ;;  %v1312_v29 = vld [vmem:[%s1872_s4 + $0x30] sm:$0xff] }
 0x316   :  { %1316 = vmatmul.mubr.msk.f32.gmra.mxu0 %vm312_vm2, %v1312_v29  ;;  %v1814_v33 = vpop.f32.mrf.mxu1 }
 0x317   :  { %741 = vrot.lane.b32.xlu1 %v1705_v44, %s1408_s25  ;;  %856 = vmatprep.mubr.f32.mxu0 %v1404_v2 }
 0x318   :  { %v1816_v36 = vpop.f32.mrf.mxu1 }
 0x319   :  { %735 = vrot.lane.b32.xlu0 %v1709_v45, %s1408_s25 }
 0x31a   :  { %1317 = vmatmul.mubr.msk.f32.gmra.mxu0 %vm312_vm2, %v1313_v50  ;;  %v1818_v38 = vpop.f32.mrf.mxu1 }
 0x31b   :  { %739 = vrot.lane.b32.xlu1 %v1716_v24, %s1408_s25  ;;  %1133 = vmatprep.mubr.f32.mxu0 %v1404_v2 }
 0x31d   :  { %720 = vrot.lane.b32.xlu0 %v1702_v41, %s1409_s28 }
 0x31f   :  { %724 = vrot.lane.b32.xlu1 %v1705_v44, %s1409_s28 }
 0x321   :  { %718 = vrot.lane.b32.xlu0 %v1709_v45, %s1409_s28 }
 0x323   :  { %722 = vrot.lane.b32.xlu1 %v1716_v24, %s1409_s28 }
 0x325   :  { %986 = vperm.xlu0 %1350, %v1325_v34  }
 0x327   :  { %981 = vperm.xlu1 %1351, %v1324_v49  }
 0x329   :  { %976 = vperm.xlu0 %1350, %v1323_v51  }
 0x32b   :  { %971 = vperm.xlu1 %1351, %v1322_v52  }
 0x32d   :  { %605 = vperm.xlu0 %1350, %v587_v53  }
 0x32f   :  { %1054 = vperm.xlu1 %1351, %v1337_v54  }
 0x331   :  { %600 = vperm.xlu0 %1350, %v586_v55  }
 0x333   :  { %1049 = vperm.xlu1 %1351, %v1336_v56  }
 0x335   :  { %1164 = vperm.xlu0 %1350, %v1160_v57  }
 0x337   :  { %1169 = vperm.xlu1 %1351, %v1161_v58  }
 0x387   :  { %v738_v59 = vpop.permute.xlu0 %737 }
 0x389   :  { %v742_v62 = vpop.permute.xlu1 %741 }
 0x38a   :  { %v745_v63 = vsel %vm264_vm10, %v738_v59, %v742_v62  ;;  %v747_v0 = vsel %vm264_vm10, %v742_v62, %v738_v59 }
 0x38b   :  { %v750_v1 = vmul.f32 %v1288_v60, %v745_v63  ;;  %v751_v3 = vmul.f32 %v1289_v61, %v747_v0  ;;  %v736_v4 = vpop.permute.xlu0 %735 }
 0x38d   :  { %895 = vmatprep.subr.mxu1 %v751_v3  ;;  %v740_v5 = vpop.permute.xlu1 %739 }
 0x38e   :  { %v744_v6 = vsel %vm264_vm10, %v736_v4, %v740_v5  ;;  %v746_v7 = vsel %vm264_vm10, %v740_v5, %v736_v4  ;;  %896 = vmatpush1.msra.mxu1 %v750_v1 }
 0x38f   :  { %v748_v8 = vmul.f32 %v1288_v60, %v744_v6  ;;  %v749_v9 = vmul.f32 %v1289_v61, %v746_v7  ;;  %v721_v10 = vpop.permute.xlu0 %720 }
 0x391   :  { %v725_v11 = vpop.permute.xlu1 %724  ;;  %897 = vmatprep.subr.mxu1 %v749_v9 }
 0x392   :  { %v728_v13 = vsel %vm726_vm13, %v721_v10, %v725_v11  ;;  %898 = vmatpush1.msra.mxu1 %v748_v8  ;;  %v730_v15 = vsel %vm726_vm13, %v725_v11, %v721_v10 }
 0x393   :  { %899 = vmatprep.subr.mxu1 %v1705_v44  ;;  %v734_v48 = vmul.f32 %v1285_v12, %v728_v13  ;;  %v719_v16 = vpop.permute.xlu0 %718  ;;  %v733_v21 = vmul.f32 %v1284_v14, %v730_v15 }
 0x394   :  { %900 = vmatpush1.msra.mxu1 %v1702_v41 }
 0x395   :  { %v723_v18 = vpop.permute.xlu1 %722  ;;  %901 = vmatprep.subr.mxu1 %v1716_v24 }
 0x396   :  { %v727_v22 = vsel %vm726_vm13, %v719_v16, %v723_v18  ;;  %v729_v23 = vsel %vm726_vm13, %v723_v18, %v719_v16  ;;  %902 = vmatpush1.msra.mxu1 %v1709_v45 }
 0x397   :  { %v731_v25 = vmul.f32 %v1284_v14, %v729_v23  ;;  %v732_v26 = vmul.f32 %v1285_v12, %v727_v22  ;;  %903 = vmatprep.subr.mxu1 %v734_v48 }
 0x398   :  { %904 = vmatpush1.msra.mxu1 %v733_v21 }
 0x399   :  { %905 = vmatprep.subr.mxu1 %v732_v26 }
 0x39a   :  { %906 = vmatpush1.msra.mxu1 %v731_v25 }
 0x39b   :  { %1318 = vmatmul.mubr.msk.f32.vlgmr.msra.gmra.mxu1 %vm414_vm8, %v1306_v27 }
 0x39c   :  { %945 = vmatprep.mubr.f32.mxu1 %v1404_v2 }
 0x39f   :  { %1319 = vmatmul.mubr.msk.f32.gmra.mxu1 %vm414_vm8, %v1307_v46 }
 0x3a0   :  { %951 = vmatprep.mubr.f32.mxu1 %v1404_v2  ;;  %v987_v52 = vpop.permute.xlu0 %986 }
 0x3a2   :  { %v982_v24 = vpop.permute.xlu1 %981 }
 0x3a3   :  { %1320 = vmatmul.mubr.msk.f32.gmra.mxu1 %vm414_vm8, %v1308_v28 }
 0x3a4   :  { %957 = vmatprep.mubr.f32.mxu1 %v1404_v2  ;;  %v977_v3 = vpop.permute.xlu0 %976 }
 0x3a6   :  { %v972_v14 = vpop.permute.xlu1 %971 }
 0x3a7   :  { %1321 = vmatmul.mubr.msk.f32.gmra.mxu1 %vm414_vm8, %v1309_v30 }
 0x3a8   :  { %1242 = vmatprep.mubr.f32.mxu1 %v1404_v2 }
 0x3d0   :  { %v846_v37 = vpop.f32.mrf.mxu0 }
 0x3d2   :  { %v848_v39 = vpop.f32.mrf.mxu0 }
 0x3d6   :  { %v852_v42 = vpop.f32.mrf.mxu0 }
 0x3d8   :  { %v854_v45 = vpop.f32.mrf.mxu0 }
 0x3da   :  { %v858_v29 = vpop.f32.mrf.mxu0 }
 0x3dc   :  { %v860_v56 = vpop.f32.mrf.mxu0 }
 0x45b   :  { %v941_v40 = vpop.f32.mrf.mxu1 }
 0x45c   :  { %v942_v11 = vadd.f32 %v941_v40, %v840_v32  ;;  %v1331_v40 = vld [vmem:[%s1875_s6 + $0x28] sm:$0xff] }
 0x45d   :  { %v943_v41 = vpop.f32.mrf.mxu1 }
 0x45e   :  { %v944_v8 = vadd.f32 %v943_v41, %v842_v35  ;;  %v989_v18 = vadd.f32 %v972_v14, %v942_v11  ;;  %v1332_v41 = vld [vmem:[%s1875_s6 + $0x30] sm:$0xff] }
 0x45f   :  { %v947_v43 = vpop.f32.mrf.mxu1 }
 0x460   :  { %v948_v0 = vadd.f32 %v947_v43, %v846_v37  ;;  %v990_v48 = vadd.f32 %v972_v14, %v944_v8 }
 0x461   :  { %v949_v44 = vpop.f32.mrf.mxu1 }
 0x462   :  { %v950_v1 = vadd.f32 %v949_v44, %v848_v39  ;;  %v991_v4 = vadd.f32 %v977_v3, %v948_v0  ;;  %v1330_v39 = vld [vmem:[%s1875_s6 + $0x20] sm:$0xff] }
 0x463   :  { %v953_v47 = vpop.f32.mrf.mxu1 }
 0x464   :  { %v954_v17 = vadd.f32 %v953_v47, %v852_v42  ;;  %v992_v6 = vadd.f32 %v977_v3, %v950_v1  ;;  %v1333_v42 = vld [vmem:[%s1875_s6 + $0x38] sm:$0xff]  ;;  %v1158_v1 = vld [vmem:[%s1877_s8] sm:$0xff] }
 0x465   :  { %v955_v34 = vpop.f32.mrf.mxu1 }
 0x466   :  { %v993_v49 = vadd.f32 %v982_v24, %v954_v17  ;;  %v956_v50 = vadd.f32 %v955_v34, %v854_v45  ;;  %v1055_v17 = vpop.permute.xlu1 %1054 }
 0x467   :  { %v959_v51 = vpop.f32.mrf.mxu1 }
 0x468   :  { %v994_v53 = vadd.f32 %v982_v24, %v956_v50  ;;  %v960_v54 = vadd.f32 %v959_v51, %v858_v29  ;;  %v1326_v55 = vmul.f32 -1.442695, %v993_v49  ;;  %v606_v24 = vpop.permute.xlu0 %605 }
 0x469   :  { %v961_v57 = vpop.f32.mrf.mxu1 }
 0x46a   :  { %v1327_v58 = vmul.f32 -1.442695, %v994_v53  ;;  %v995_v59 = vadd.f32 %v987_v52, %v960_v54  ;;  %v962_v60 = vadd.f32 %v961_v57, %v860_v56  ;;  %v1050_v51 = vpop.permute.xlu1 %1049  ;;  %v708_v54 = vadd.f32 %v1818_v38, %v606_v24 }
 0x46b   :  { %v706_v57 = vadd.f32 %v1816_v36, %v606_v24 }
 0x46c   :  { %1376 = vpow2.f32 %v1327_v58  ;;  %v1328_v61 = vmul.f32 -1.442695, %v995_v59  ;;  %v996_v62 = vadd.f32 %v987_v52, %v962_v60  ;;  %v601_v50 = vpop.permute.xlu0 %600 }
 0x46d   :  { %1378 = vpow2.f32 %v1326_v55  ;;  %v702_v59 = vadd.f32 %v1814_v33, %v601_v50  ;;  %v1159_v33 = vld [vmem:[%s1877_s8 + $0x8] sm:$0xff] }
 0x46e   :  { %1380 = vpow2.f32 %v1328_v61  ;;  %v1329_v63 = vmul.f32 -1.442695, %v996_v62  ;;  %v700_v61 = vadd.f32 %v1812_v31, %v601_v50  ;;  %v1170_v8 = vpop.permute.xlu1 %1169 }
 0x470   :  { %1382 = vpow2.f32 %v1329_v63  ;;  %v1165_v31 = vpop.permute.xlu0 %1164 }
 0x471   :  { %1384 = vtanh.f32 %v991_v4 }
 0x472   :  { %1386 = vtanh.f32 %v992_v6 }
 0x479   :  { %v1377_v5 = vpop.eup %1376 }
 0x47a   :  { %v1379_v7 = vpop.eup %1378  ;;  %v1014_v9 = vadd.f32 1.0, %v1377_v5 }
 0x47b   :  { %v1381_v10 = vpop.eup %1380  ;;  %v1013_v15 = vadd.f32 1.0, %v1379_v7 }
 0x47c   :  { %v1015_v12 = vadd.f32 1.0, %v1381_v10  ;;  %1388 = vrcp.f32 %v1014_v9 }
 0x47d   :  { %v1383_v13 = vpop.eup %1382 }
 0x47e   :  { %v1016_v16 = vadd.f32 1.0, %v1383_v13  ;;  %1390 = vrcp.f32 %v1015_v12  ;;  %v1385_v21 = vpop.eup %1384 }
 0x47f   :  { %v1387_v22 = vpop.eup %1386 }
 0x480   :  { %1392 = vrcp.f32 %v1016_v16 }
 0x481   :  { %1394 = vrcp.f32 %v1013_v15 }
 0x482   :  { %1396 = vtanh.f32 %v990_v48 }
 0x483   :  { %1398 = vtanh.f32 %v989_v18 }
 0x489   :  { %v1389_v23 = vpop.eup %1388 }
 0x48b   :  { %v1391_v25 = vpop.eup %1390 }
 0x48c   :  { %v1027_v30 = vmul.f32 %v1391_v25, %v1385_v21 }
 0x48d   :  { %v1393_v26 = vpop.eup %1392 }
 0x48e   :  { %v1395_v27 = vpop.eup %1394  ;;  %v1028_v46 = vmul.f32 %v1393_v26, %v1387_v22 }
 0x48f   :  { %v1397_v28 = vpop.eup %1396 }
 0x490   :  { %v1399_v32 = vpop.eup %1398  ;;  %1097 = vmatprep.subr.mxu0 %v1028_v46  ;;  %v1026_v35 = vmul.f32 %v1397_v28, %v1389_v23 }
 0x491   :  { %1098 = vmatpush1.msra.mxu0 %v1027_v30  ;;  %v1025_v37 = vmul.f32 %v1399_v32, %v1395_v27 }
 0x492   :  { %1099 = vmatprep.subr.mxu0 %v1026_v35 }
 0x493   :  { %1100 = vmatpush1.msra.mxu0 %v1025_v37 }
 0x494   :  { %1338 = vmatmul.mubr.msk.f32.vlgmr.msra.gmra.mxu0 %vm608_vm9, %v1330_v39 }
 0x495   :  { %1137 = vmatprep.mubr.f32.mxu0 %v1404_v2 }
 0x498   :  { %1339 = vmatmul.mubr.msk.f32.gmra.mxu0 %vm608_vm9, %v1331_v40 }
 0x499   :  { %1141 = vmatprep.mubr.f32.mxu0 %v1404_v2 }
 0x49c   :  { %1340 = vmatmul.mubr.msk.f32.gmra.mxu0 %vm608_vm9, %v1332_v41 }
 0x49d   :  { %1147 = vmatprep.mubr.f32.mxu0 %v1404_v2 }
 0x4a0   :  { %1341 = vmatmul.mubr.msk.f32.gmra.mxu0 %vm608_vm9, %v1333_v42 }
 0x554   :  { %v1135_v43 = vpop.f32.mrf.mxu0 }
 0x556   :  { %v1136_v44 = vpop.f32.mrf.mxu0 }
 0x558   :  { %v1139_v45 = vpop.f32.mrf.mxu0 }
 0x55a   :  { %v1140_v47 = vpop.f32.mrf.mxu0 }
 0x55c   :  { %v1143_v29 = vpop.f32.mrf.mxu0 }
 0x55d   :  { %v1144_v58 = vadd.f32 %v1143_v29, %v1050_v51 }
 0x55e   :  { %v1145_v34 = vpop.f32.mrf.mxu0 }
 0x55f   :  { %v1146_v55 = vadd.f32 %v1145_v34, %v1050_v51  ;;  %v1154_v0 = vadd.f32 %v1144_v58, %v700_v61 }
 0x560   :  { %v1149_v49 = vpop.f32.mrf.mxu0 }
 0x561   :  { %v1150_v52 = vadd.f32 %v1149_v49, %v1055_v17  ;;  %v1155_v63 = vadd.f32 %v1146_v55, %v702_v59 }
 0x562   :  { %v1151_v53 = vpop.f32.mrf.mxu0 }
 0x563   :  { %v1152_v56 = vadd.f32 %v1151_v53, %v1055_v17  ;;  %v1156_v62 = vadd.f32 %v1150_v52, %v706_v57 }
 0x565   :  { %v1157_v60 = vadd.f32 %v1152_v56, %v708_v54 }
 0x567   :  { %1206 = vmatprep.subr.mxu1 %v1157_v60 }
 0x568   :  { %1207 = vmatpush1.msra.mxu1 %v1156_v62 }
 0x569   :  { %1208 = vmatprep.subr.mxu1 %v1155_v63 }
 0x56a   :  { %1209 = vmatpush1.msra.mxu1 %v1154_v0 }
 0x56b   :  { %1342 = vmatmul.mubr.msk.f32.vlgmr.msra.gmra.mxu1 %vm608_vm9, %v1158_v1 }
 0x56c   :  { %1248 = vmatprep.mubr.f32.mxu1 %v1404_v2 }
 0x56f   :  { %1343 = vmatmul.mubr.msk.f32.gmra.mxu1 %vm608_vm9, %v1159_v33 }
 0x62b   :  { %v1244_v36 = vpop.f32.mrf.mxu1 }
 0x62c   :  { %v1245_v38 = vadd.f32 %v1244_v36, %v1165_v31 }
 0x62d   :  { %v1246_v3 = vpop.f32.mrf.mxu1 }
 0x62e   :  { %v1255_v4 = vmul.f32 1.442695, %v1245_v38  ;;  %1265 = vst [vmem:[%s1878_s13] sm:$0x3f] %v1245_v38  ;;  %v1247_v5 = vadd.f32 %v1246_v3, %v1165_v31 }
 0x62f   :  { %v1250_v2 = vpop.f32.mrf.mxu1 }
 0x630   :  { %1400 = vpow2.f32 %v1255_v4  ;;  %v1257_v6 = vmul.f32 1.442695, %v1247_v5  ;;  %1266 = vst [vmem:[%s1878_s13 + $0x8] sm:$0x3f] %v1247_v5  ;;  %v1251_v10 = vadd.f32 %v1250_v2, %v1170_v8 }
 0x631   :  { %v1252_v9 = vpop.f32.mrf.mxu1 }
 0x632   :  { %1402 = vpow2.f32 %v1257_v6  ;;  %v1253_v14 = vadd.f32 %v1252_v9, %v1170_v8 }
 0x63d   :  { %v1401_v7 = vpop.eup %1400 }
 0x63e   :  { %v1259_v11 = vmul.f32 %v1401_v7, %v1677_v19 }
 0x63f   :  { %v1403_v12 = vpop.eup %1402 }
 0x640   :  { %v1261_v13 = vadd.f32 %v1259_v11, %v1251_v10  ;;  %v1260_v15 = vmul.f32 %v1403_v12, %v1679_v20 }
 0x642   :  { %1263 = vst [vmem:[%s1879_s12] sm:$0x3f] %v1261_v13  ;;  %v1262_v48 = vadd.f32 %v1260_v15, %v1253_v14 }
 0x644   :  { %1264 = vst [vmem:[%s1879_s12 + $0x8] sm:$0x3f] %v1262_v48 }

// kernel: waveglow_forward.4
= control target key start
LH: loop header
LB: loop body
LE: loop exit
PB: predicated region body
PF: predicated region fallthrough
CT: control target
= control target key end

     0   :  { %v1393_v2 = vmov 0.0   ;;  %vm62_vm0 = vcmask 64512   ;;  %v1394_v4 = vmov 0   ;;  %s1395_s15 = smov 127   ;;  %s1396_s22 = smov 1   ;;  %vm305_vm1 = vcmask 523264   ;;  %s1851_s11 = inlined_call_operand.vmem [shape: f32[8,256], index: 11, kind: input, shape index: {}]   ;;  %s1852_s1 = inlined_call_operand.vmem [shape: f32[16,8], index: 1, kind: input, shape index: {}]   ;;  %s1853_s2 = inlined_call_operand.vmem [shape: f32[16,1], index: 2, kind: input, shape index: {}]   ;;  %s1854_s10 = inlined_call_operand.vmem [shape: f32[64,256], index: 10, kind: input, shape index: {}]   ;;  %s1855_s0 = inlined_call_operand.vmem [shape: f32[8,8], index: 0, kind: input, shape index: {}]   ;;  %s1856_s5 = inlined_call_operand.vmem [shape: f32[2,32,1], index: 5, kind: input, shape index: {}]   ;;  %s1857_s4 = inlined_call_operand.vmem [shape: f32[2,32,64], index: 4, kind: input, shape index: {}]   ;;  %s1858_s7 = inlined_call_operand.vmem [shape: f32[2,32,1], index: 7, kind: input, shape index: {}]   ;;  %s1859_s3 = inlined_call_operand.vmem [shape: f32[2,32,48], index: 3, kind: input, shape index: {}]   ;;  %s1860_s6 = inlined_call_operand.vmem [shape: f32[2,32,16], index: 6, kind: input, shape index: {}]   ;;  %s1861_s9 = inlined_call_operand.vmem [shape: f32[16,1], index: 9, kind: input, shape index: {}]   ;;  %s1862_s8 = inlined_call_operand.vmem [shape: f32[16,16], index: 8, kind: input, shape index: {}]   ;;  %s1863_s13 = inlined_call_operand.vmem [shape: f32[8,256], index: 13, kind: output, shape index: {1}]   ;;  %s1864_s12 = inlined_call_operand.vmem [shape: f32[8,256], index: 12, kind: output, shape index: {0}]  }
   0x1   :  { %v60_v0 = vld [vmem:[%s1851_s11 + $0x8] sm:$0xff]  ;;  %v59_v1 = vld [vmem:[%s1851_s11] sm:$0xff]  ;;  %221 = vmatprep.mubr.f32.mxu1 %v1393_v2  ;;  %1339 = vset.pattern.permute.xlu0 %v1394_v4  ;;  %v58_v9 = vld [vmem:[%s1854_s10 + $0x78] sm:$0xff]  ;;  %v234_v45 = vlaneseq  ;;  %vm407_vm7 = vcmask 392192   ;;  %vm601_vm8 = vcmask 130048   ;;  %s1397_s25 = smov 126  }
   0x2   :  { %v137_v3 = vld [vmem:[%s1852_s1] sm:$0xff]  ;;  %187 = vmatprep.subr.mxu1 %v60_v0  ;;  %v140_v5 = vld [vmem:[%s1853_s2 + $0x8] sm:$0xff]  ;;  %96 = vmatprep.subr.mxu0 %v60_v0  ;;  %v57_v11 = vld [vmem:[%s1854_s10 + $0x70] sm:$0xff]  ;;  %s1398_s28 = smov 2  }
   0x3   :  { %188 = vmatpush1.msra.mxu1 %v59_v1  ;;  %148 = vperm.xlu0 %1339, %v140_v5   ;;  %v139_v6 = vld [vmem:[%s1853_s2] sm:$0xff]  ;;  %v138_v7 = vld [vmem:[%s1852_s1 + $0x8] sm:$0xff]  ;;  %v54_v16 = vld [vmem:[%s1854_s10 + $0x58] sm:$0xff]  ;;  %v1616_v46 = vand.u32 127, %v234_v45 }
   0x4   :  { %1269 = vmatmul.mubr.msk.f32.vlgmr.msra.gmra.mxu1 %vm62_vm0, %v137_v3  ;;  %97 = vmatpush1.msra.mxu0 %v59_v1  ;;  %v61_v10 = vld [vmem:[%s1855_s0] sm:$0xff]  ;;  %v56_v13 = vld [vmem:[%s1854_s10 + $0x68] sm:$0xff]  ;;  %v1521_v18 = vld [vmem:[%s1854_s10 + $0x50] sm:$0xff] }
   0x5   :  { %227 = vmatprep.mubr.f32.mxu1 %v1393_v2  ;;  %130 = vmatprep.mubr.f32.mxu0 %v1393_v2  ;;  %v1509_v14 = vld [vmem:[%s1854_s10 + $0x60] sm:$0xff]  ;;  %v52_v20 = vld [vmem:[%s1854_s10 + $0x48] sm:$0xff]  ;;  %v50_v23 = vld [vmem:[%s1854_s10 + $0x38] sm:$0xff]  ;;  %v236_v47 = vadd.s32 128, %v1616_v46  ;;  %vm251_vm2 = vcmp.lt.s32.totalorder %v1616_v46, 127  ;;  %vm271_vm5 = vcmp.lt.s32.totalorder %v1616_v46, 1 }
   0x6   :  { %1340 = vset.pattern.permute.xlu1 %v1394_v4  ;;  %334 = vmatprep.subr.mxu0 %v58_v9  ;;  %v51_v21 = vld [vmem:[%s1854_s10 + $0x40] sm:$0xff]  ;;  %v49_v25 = vld [vmem:[%s1854_s10 + $0x30] sm:$0xff]  ;;  %v48_v27 = vld [vmem:[%s1854_s10 + $0x28] sm:$0xff]  ;;  %v1275_v50 = vsel %vm251_vm2, 1.0, %v1393_v2  ;;  %vm239_vm6 = vcmp.ge.s32.totalorder %v1616_v46, 1  ;;  %vm257_vm9 = vcmp.lt.s32.totalorder %v1616_v46, 126 }
   0x7   :  { %143 = vperm.xlu0 %1339, %v139_v6   ;;  %1268 = vmatmul.mubr.msk.f32.vlgmr.msra.gmra.mxu0 %vm62_vm0, %v61_v10  ;;  %v47_v28 = vld [vmem:[%s1854_s10 + $0x20] sm:$0xff]  ;;  %v46_v30 = vld [vmem:[%s1854_s10 + $0x18] sm:$0xff]  ;;  %v45_v31 = vld [vmem:[%s1854_s10 + $0x10] sm:$0xff]  ;;  %v1619_v48 = vand.u32 127, %v236_v47  ;;  %v1271_v4 = vsel %vm239_vm6, 1.0, %v1393_v2  ;;  %vm719_vm12 = vcmp.lt.s32.totalorder %v1616_v46, 2 }
   0x8   :  { %1270 = vmatmul.mubr.msk.f32.gmra.mxu1 %vm62_vm0, %v138_v7  ;;  %335 = vmatpush1.msra.mxu0 %v57_v11  ;;  %v44_v32 = vld [vmem:[%s1854_s10 + $0x8] sm:$0xff]  ;;  %v512_v33 = vld [vmem:[%s1856_s5 + $0x18] sm:$0xff]  ;;  %v43_v35 = vld [vmem:[%s1854_s10] sm:$0xff]  ;;  %vm245_vm13 = vcmp.ge.s32.totalorder %v1616_v46, 2 }
   0x9   :  { %484 = vmatprep.mubr.f32.mxu1 %v1393_v2  ;;  %382 = vmatprep.mubr.f32.mxu0 %v1393_v2  ;;  %v301_v36 = vld [vmem:[%s1857_s4] sm:$0xff]  ;;  %v510_v37 = vld [vmem:[%s1856_s5 + $0x8] sm:$0xff]  ;;  %v303_v40 = vld [vmem:[%s1857_s4 + $0x10] sm:$0xff]  ;;  %vm252_vm3 = vcmp.lt.s32.totalorder %v1619_v48, 127  ;;  %vm240_vm4 = vcmp.ge.s32.totalorder %v1619_v48, 1  ;;  %vm258_vm10 = vcmp.lt.s32.totalorder %v1619_v48, 126 }
   0xa   :  { %336 = vmatprep.subr.mxu0 %v56_v13  ;;  %v302_v38 = vld [vmem:[%s1857_s4 + $0x8] sm:$0xff]  ;;  %v304_v41 = vld [vmem:[%s1857_s4 + $0x18] sm:$0xff]  ;;  %v511_v42 = vld [vmem:[%s1856_s5 + $0x10] sm:$0xff]  ;;  %v1276_v51 = vsel %vm252_vm3, 1.0, %v1393_v2  ;;  %v1272_v1 = vsel %vm240_vm4, 1.0, %v1393_v2  ;;  %vm246_vm11 = vcmp.ge.s32.totalorder %v1619_v48, 2 }
   0xb   :  { %337 = vmatpush1.msra.mxu0 %v1509_v14  ;;  %v578_v39 = vld [vmem:[%s1858_s7 + $0x8] sm:$0xff]  ;;  %v509_v43 = vld [vmem:[%s1856_s5] sm:$0xff] }
   0xc   :  { %338 = vmatprep.subr.mxu0 %v54_v16  ;;  %v577_v44 = vld [vmem:[%s1858_s7] sm:$0xff]  ;;  %v1296_v46 = vld [vmem:[%s1859_s3 + $0x28] sm:$0xff] }
   0xd   :  { %339 = vmatpush1.msra.mxu0 %v1521_v18 }
   0xe   :  { %340 = vmatprep.subr.mxu0 %v52_v20 }
   0xf   :  { %341 = vmatpush1.msra.mxu0 %v51_v21 }
  0x10   :  { %342 = vmatprep.subr.mxu0 %v50_v23 }
  0x11   :  { %343 = vmatpush1.msra.mxu0 %v49_v25 }
  0x12   :  { %344 = vmatprep.subr.mxu0 %v48_v27 }
  0x13   :  { %345 = vmatpush1.msra.mxu0 %v47_v28 }
  0x14   :  { %346 = vmatprep.subr.mxu0 %v46_v30 }
  0x15   :  { %347 = vmatpush1.msra.mxu0 %v45_v31 }
  0x16   :  { %348 = vmatprep.subr.mxu0 %v44_v32 }
  0x17   :  { %349 = vmatpush1.msra.mxu0 %v43_v35 }
  0x18   :  { %1279 = vmatmul.mubr.msk.f32.vlgmr.msra.gmra.mxu0 %vm305_vm1, %v301_v36  ;;  %783 = vmatprep.subr.mxu0 %v58_v9 }
  0x19   :  { %388 = vmatprep.mubr.f32.mxu0 %v1393_v2  ;;  %784 = vmatpush1.msra.mxu0 %v57_v11 }
  0x1a   :  { %785 = vmatprep.subr.mxu0 %v56_v13 }
  0x1b   :  { %786 = vmatpush1.msra.mxu0 %v1509_v14  ;;  %v297_v14 = vld [vmem:[%s1859_s3] sm:$0xff] }
  0x1c   :  { %1280 = vmatmul.mubr.msk.f32.gmra.mxu0 %vm305_vm1, %v302_v38  ;;  %787 = vmatprep.subr.mxu0 %v54_v16  ;;  %v299_v16 = vld [vmem:[%s1859_s3 + $0x10] sm:$0xff] }
  0x1d   :  { %394 = vmatprep.mubr.f32.mxu0 %v1393_v2  ;;  %788 = vmatpush1.msra.mxu0 %v1521_v18  ;;  %v300_v18 = vld [vmem:[%s1859_s3 + $0x18] sm:$0xff] }
  0x1e   :  { %789 = vmatprep.subr.mxu0 %v52_v20 }
  0x1f   :  { %790 = vmatpush1.msra.mxu0 %v51_v21 }
  0x20   :  { %1281 = vmatmul.mubr.msk.f32.gmra.mxu0 %vm305_vm1, %v303_v40  ;;  %791 = vmatprep.subr.mxu0 %v50_v23 }
  0x21   :  { %400 = vmatprep.mubr.f32.mxu0 %v1393_v2  ;;  %792 = vmatpush1.msra.mxu0 %v49_v25 }
  0x22   :  { %793 = vmatprep.subr.mxu0 %v48_v27 }
  0x23   :  { %794 = vmatpush1.msra.mxu0 %v47_v28 }
  0x24   :  { %1282 = vmatmul.mubr.msk.f32.gmra.mxu0 %vm305_vm1, %v304_v41  ;;  %795 = vmatprep.subr.mxu0 %v46_v30 }
  0x25   :  { %831 = vmatprep.mubr.f32.mxu0 %v1393_v2  ;;  %796 = vmatpush1.msra.mxu0 %v45_v31 }
  0x26   :  { %797 = vmatprep.subr.mxu0 %v44_v32 }
  0x27   :  { %798 = vmatpush1.msra.mxu0 %v43_v35 }
  0x7e   :  { %v149_v8 = vpop.permute.xlu0 %148 }
  0x82   :  { %v144_v12 = vpop.permute.xlu0 %143 }
  0xc4   :  { %v223_v15 = vpop.f32.mrf.mxu1 }
  0xc5   :  { %v1515_v17 = vadd.f32 %v223_v15, %v144_v12  ;;  %v298_v15 = vld [vmem:[%s1859_s3 + $0x8] sm:$0xff] }
  0xc6   :  { %v225_v19 = vpop.f32.mrf.mxu1 }
  0xc7   :  { %280 = vrot.lane.b32.xlu0 %v1515_v17, %s1395_s15  ;;  %v1568_v34 = vadd.f32 %v225_v19, %v144_v12  ;;  %v1662_v19 = vpop.f32.mrf.mxu0 }
  0xc8   :  { %v229_v22 = vpop.f32.mrf.mxu1 }
  0xc9   :  { %v1535_v24 = vadd.f32 %v229_v22, %v149_v8  ;;  %v1664_v20 = vpop.f32.mrf.mxu0 }
  0xca   :  { %v231_v26 = vpop.f32.mrf.mxu1 }
  0xcb   :  { %282 = vrot.lane.b32.xlu1 %v1535_v24, %s1395_s15  ;;  %265 = vrot.lane.b32.xlu0 %v1535_v24, %s1396_s22  ;;  %v1550_v29 = vadd.f32 %v231_v26, %v149_v8 }
  0xcf   :  { %286 = vrot.lane.b32.xlu1 %v1550_v29, %s1395_s15  ;;  %263 = vrot.lane.b32.xlu0 %v1515_v17, %s1396_s22 }
  0xd3   :  { %284 = vrot.lane.b32.xlu1 %v1568_v34, %s1395_s15  ;;  %530 = vperm.xlu0 %1339, %v512_v33  }
  0xd7   :  { %269 = vrot.lane.b32.xlu1 %v1550_v29, %s1396_s22  ;;  %520 = vperm.xlu0 %1339, %v510_v37  }
  0xd8   :  { %v384_v21 = vpop.f32.mrf.mxu0 }
  0xda   :  { %v386_v22 = vpop.f32.mrf.mxu0 }
  0xdb   :  { %267 = vrot.lane.b32.xlu1 %v1568_v34, %s1396_s22  ;;  %588 = vperm.xlu0 %1339, %v578_v39  }
  0xdc   :  { %v390_v23 = vpop.f32.mrf.mxu0 }
  0xde   :  { %v392_v25 = vpop.f32.mrf.mxu0 }
  0xdf   :  { %525 = vperm.xlu1 %1340, %v511_v42  }
  0xe0   :  { %v396_v28 = vpop.f32.mrf.mxu0 }
  0xe2   :  { %v398_v32 = vpop.f32.mrf.mxu0 }
  0xe3   :  { %515 = vperm.xlu1 %1340, %v509_v43  }
  0xe4   :  { %v402_v37 = vpop.f32.mrf.mxu0 }
  0xe6   :  { %v404_v47 = vpop.f32.mrf.mxu0 }
  0xe7   :  { %583 = vperm.xlu1 %1340, %v577_v44  }
 0x139   :  { %v281_v52 = vpop.permute.xlu0 %280 }
 0x13d   :  { %v283_v49 = vpop.permute.xlu1 %282  ;;  %v266_v61 = vpop.permute.xlu0 %265 }
 0x141   :  { %v287_v53 = vpop.permute.xlu1 %286  ;;  %v264_v6 = vpop.permute.xlu0 %263 }
 0x142   :  { %v290_v54 = vsel %vm251_vm2, %v283_v49, %v287_v53  ;;  %v292_v55 = vsel %vm251_vm2, %v287_v53, %v283_v49 }
 0x143   :  { %v295_v56 = vmul.f32 %v1275_v50, %v290_v54  ;;  %v296_v57 = vmul.f32 %v1276_v51, %v292_v55 }
 0x145   :  { %440 = vmatprep.subr.mxu1 %v296_v57  ;;  %v285_v58 = vpop.permute.xlu1 %284 }
 0x146   :  { %v289_v59 = vsel %vm251_vm2, %v281_v52, %v285_v58  ;;  %v291_v60 = vsel %vm251_vm2, %v285_v58, %v281_v52  ;;  %441 = vmatpush1.msra.mxu1 %v295_v56 }
 0x147   :  { %v293_v62 = vmul.f32 %v1275_v50, %v289_v59  ;;  %v294_v63 = vmul.f32 %v1276_v51, %v291_v60 }
 0x149   :  { %v270_v0 = vpop.permute.xlu1 %269  ;;  %442 = vmatprep.subr.mxu1 %v294_v63 }
 0x14a   :  { %v273_v3 = vsel %vm271_vm5, %v266_v61, %v270_v0  ;;  %443 = vmatpush1.msra.mxu1 %v293_v62  ;;  %v275_v5 = vsel %vm271_vm5, %v270_v0, %v266_v61 }
 0x14b   :  { %444 = vmatprep.subr.mxu1 %v1550_v29  ;;  %v279_v7 = vmul.f32 %v1272_v1, %v273_v3  ;;  %v278_v9 = vmul.f32 %v1271_v4, %v275_v5 }
 0x14c   :  { %445 = vmatpush1.msra.mxu1 %v1535_v24 }
 0x14d   :  { %v268_v8 = vpop.permute.xlu1 %267  ;;  %446 = vmatprep.subr.mxu1 %v1568_v34 }
 0x14e   :  { %v272_v10 = vsel %vm271_vm5, %v264_v6, %v268_v8  ;;  %v274_v11 = vsel %vm271_vm5, %v268_v8, %v264_v6  ;;  %447 = vmatpush1.msra.mxu1 %v1515_v17  ;;  %v531_v42 = vpop.permute.xlu0 %530 }
 0x14f   :  { %v276_v12 = vmul.f32 %v1271_v4, %v274_v11  ;;  %v277_v13 = vmul.f32 %v1272_v1, %v272_v10  ;;  %448 = vmatprep.subr.mxu1 %v279_v7 }
 0x150   :  { %449 = vmatpush1.msra.mxu1 %v278_v9 }
 0x151   :  { %450 = vmatprep.subr.mxu1 %v277_v13 }
 0x152   :  { %451 = vmatpush1.msra.mxu1 %v276_v12  ;;  %v521_v58 = vpop.permute.xlu0 %520 }
 0x153   :  { %1283 = vmatmul.mubr.msk.f32.vlgmr.msra.gmra.mxu1 %vm407_vm7, %v297_v14 }
 0x154   :  { %490 = vmatprep.mubr.f32.mxu1 %v1393_v2 }
 0x157   :  { %1284 = vmatmul.mubr.msk.f32.gmra.mxu1 %vm407_vm7, %v298_v15 }
 0x158   :  { %496 = vmatprep.mubr.f32.mxu1 %v1393_v2 }
 0x15a   :  { %v526_v35 = vpop.permute.xlu1 %525 }
 0x15b   :  { %1285 = vmatmul.mubr.msk.f32.gmra.mxu1 %vm407_vm7, %v299_v16 }
 0x15c   :  { %502 = vmatprep.mubr.f32.mxu1 %v1393_v2 }
 0x15e   :  { %v516_v4 = vpop.permute.xlu1 %515 }
 0x15f   :  { %1286 = vmatmul.mubr.msk.f32.gmra.mxu1 %vm407_vm7, %v300_v18 }
 0x160   :  { %678 = vmatprep.mubr.f32.mxu1 %v1393_v2 }
 0x213   :  { %v486_v26 = vpop.f32.mrf.mxu1 }
 0x214   :  { %v487_v3 = vadd.f32 %v486_v26, %v384_v21 }
 0x215   :  { %v488_v27 = vpop.f32.mrf.mxu1 }
 0x216   :  { %v489_v63 = vadd.f32 %v488_v27, %v386_v22  ;;  %v533_v10 = vadd.f32 %v516_v4, %v487_v3  ;;  %v573_v27 = vld [vmem:[%s1860_s6] sm:$0xff] }
 0x217   :  { %v492_v30 = vpop.f32.mrf.mxu1 }
 0x218   :  { %v493_v56 = vadd.f32 %v492_v30, %v390_v23  ;;  %v534_v8 = vadd.f32 %v516_v4, %v489_v63  ;;  %v575_v30 = vld [vmem:[%s1860_s6 + $0x10] sm:$0xff] }
 0x219   :  { %v494_v31 = vpop.f32.mrf.mxu1 }
 0x21a   :  { %v495_v57 = vadd.f32 %v494_v31, %v392_v25  ;;  %v535_v59 = vadd.f32 %v521_v58, %v493_v56  ;;  %v576_v31 = vld [vmem:[%s1860_s6 + $0x18] sm:$0xff]  ;;  %v1325_v56 = vld [vmem:[%s1858_s7 + $0x30] sm:$0xff] }
 0x21b   :  { %v498_v33 = vpop.f32.mrf.mxu1 }
 0x21c   :  { %v499_v36 = vadd.f32 %v498_v33, %v396_v28  ;;  %v536_v61 = vadd.f32 %v521_v58, %v495_v57  ;;  %v574_v28 = vld [vmem:[%s1860_s6 + $0x8] sm:$0xff]  ;;  %v1153_v57 = vld [vmem:[%s1861_s9] sm:$0xff] }
 0x21d   :  { %v500_v38 = vpop.f32.mrf.mxu1  ;;  %v1154_v58 = vld [vmem:[%s1861_s9 + $0x8] sm:$0xff] }
 0x21e   :  { %v537_v39 = vadd.f32 %v526_v35, %v499_v36  ;;  %v501_v40 = vadd.f32 %v500_v38, %v398_v32  ;;  %v584_v38 = vpop.permute.xlu1 %583 }
 0x21f   :  { %v504_v41 = vpop.f32.mrf.mxu1 }
 0x220   :  { %v538_v43 = vadd.f32 %v526_v35, %v501_v40  ;;  %v505_v44 = vadd.f32 %v504_v41, %v402_v37  ;;  %v1287_v45 = vmul.f32 -1.442695, %v537_v39  ;;  %v589_v35 = vpop.permute.xlu0 %588 }
 0x221   :  { %v506_v49 = vpop.f32.mrf.mxu1 }
 0x222   :  { %v1288_v50 = vmul.f32 -1.442695, %v538_v43  ;;  %v539_v51 = vadd.f32 %v531_v42, %v505_v44  ;;  %v507_v52 = vadd.f32 %v506_v49, %v404_v47  ;;  %v1299_v47 = vld [vmem:[%s1857_s4 + $0x20] sm:$0xff]  ;;  %v1313_v49 = vld [vmem:[%s1856_s5 + $0x30] sm:$0xff] }
 0x223   :  { %1303 = vmatmul.mubr.msk.f32.vlgmr.msra.gmra.mxu0 %vm305_vm1, %v1299_v47 }
 0x224   :  { %1341 = vpow2.f32 %v1288_v50  ;;  %v1289_v53 = vmul.f32 -1.442695, %v539_v51  ;;  %v540_v54 = vadd.f32 %v531_v42, %v507_v52  ;;  %837 = vmatprep.mubr.f32.mxu0 %v1393_v2  ;;  %v1302_v50 = vld [vmem:[%s1857_s4 + $0x38] sm:$0xff]  ;;  %v1312_v51 = vld [vmem:[%s1856_s5 + $0x28] sm:$0xff]  ;;  %v1311_v52 = vld [vmem:[%s1856_s5 + $0x20] sm:$0xff] }
 0x225   :  { %1343 = vpow2.f32 %v1287_v45 }
 0x226   :  { %1345 = vpow2.f32 %v1289_v53  ;;  %v1290_v55 = vmul.f32 -1.442695, %v540_v54  ;;  %v580_v53 = vld [vmem:[%s1858_s7 + $0x18] sm:$0xff] }
 0x227   :  { %v1326_v54 = vld [vmem:[%s1858_s7 + $0x38] sm:$0xff] }
 0x228   :  { %1347 = vpow2.f32 %v1290_v55  ;;  %v579_v55 = vld [vmem:[%s1858_s7 + $0x10] sm:$0xff] }
 0x229   :  { %1349 = vtanh.f32 %v535_v59 }
 0x22a   :  { %1351 = vtanh.f32 %v536_v61  ;;  %v1278_v61 = vsel %vm258_vm10, 1.0, %v1393_v2 }
 0x231   :  { %v1342_v60 = vpop.eup %1341 }
 0x232   :  { %v1344_v62 = vpop.eup %1343  ;;  %v558_v0 = vadd.f32 1.0, %v1342_v60  ;;  %v1277_v60 = vsel %vm257_vm9, 1.0, %v1393_v2 }
 0x233   :  { %v1346_v1 = vpop.eup %1345  ;;  %v557_v7 = vadd.f32 1.0, %v1344_v62 }
 0x234   :  { %v559_v5 = vadd.f32 1.0, %v1346_v1  ;;  %1353 = vrcp.f32 %v558_v0 }
 0x235   :  { %v1348_v6 = vpop.eup %1347 }
 0x236   :  { %v560_v9 = vadd.f32 1.0, %v1348_v6  ;;  %1355 = vrcp.f32 %v559_v5  ;;  %v1350_v11 = vpop.eup %1349 }
 0x237   :  { %v1352_v12 = vpop.eup %1351 }
 0x238   :  { %1357 = vrcp.f32 %v560_v9 }
 0x239   :  { %1359 = vrcp.f32 %v557_v7 }
 0x23a   :  { %1361 = vtanh.f32 %v534_v8 }
 0x23b   :  { %1363 = vtanh.f32 %v533_v10 }
 0x241   :  { %v1354_v13 = vpop.eup %1353 }
 0x243   :  { %v1356_v14 = vpop.eup %1355 }
 0x244   :  { %v571_v22 = vmul.f32 %v1356_v14, %v1350_v11  ;;  %v1273_v14 = vsel %vm245_vm13, 1.0, %v1393_v2 }
 0x245   :  { %v1358_v15 = vpop.eup %1357 }
 0x246   :  { %v1360_v16 = vpop.eup %1359  ;;  %v572_v18 = vmul.f32 %v1358_v15, %v1352_v12  ;;  %v1274_v12 = vsel %vm246_vm11, 1.0, %v1393_v2 }
 0x247   :  { %v1362_v21 = vpop.eup %1361 }
 0x248   :  { %v1364_v23 = vpop.eup %1363  ;;  %642 = vmatprep.subr.mxu1 %v572_v18  ;;  %v570_v25 = vmul.f32 %v1362_v21, %v1354_v13 }
 0x249   :  { %643 = vmatpush1.msra.mxu1 %v571_v22  ;;  %v569_v26 = vmul.f32 %v1364_v23, %v1360_v16 }
 0x24a   :  { %644 = vmatprep.subr.mxu1 %v570_v25 }
 0x24b   :  { %645 = vmatpush1.msra.mxu1 %v569_v26 }
 0x24c   :  { %1291 = vmatmul.mubr.msk.f32.vlgmr.msra.gmra.mxu1 %vm601_vm8, %v573_v27  ;;  %v1295_v27 = vld [vmem:[%s1859_s3 + $0x20] sm:$0xff] }
 0x24d   :  { %684 = vmatprep.mubr.f32.mxu1 %v1393_v2 }
 0x250   :  { %1292 = vmatmul.mubr.msk.f32.gmra.mxu1 %vm601_vm8, %v574_v28  ;;  %v1297_v28 = vld [vmem:[%s1859_s3 + $0x30] sm:$0xff] }
 0x251   :  { %690 = vmatprep.mubr.f32.mxu1 %v1393_v2 }
 0x254   :  { %1293 = vmatmul.mubr.msk.f32.gmra.mxu1 %vm601_vm8, %v575_v30  ;;  %v1298_v30 = vld [vmem:[%s1859_s3 + $0x38] sm:$0xff] }
 0x255   :  { %696 = vmatprep.mubr.f32.mxu1 %v1393_v2 }
 0x258   :  { %1294 = vmatmul.mubr.msk.f32.gmra.mxu1 %vm601_vm8, %v576_v31 }
 0x259   :  { %932 = vmatprep.mubr.f32.mxu1 %v1393_v2 }
 0x30c   :  { %v680_v32 = vpop.f32.mrf.mxu1 }
 0x30d   :  { %v681_v40 = vadd.f32 %v680_v32, %v584_v38  ;;  %v833_v32 = vpop.f32.mrf.mxu0 }
 0x30e   :  { %v682_v33 = vpop.f32.mrf.mxu1 }
 0x30f   :  { %v683_v43 = vadd.f32 %v682_v33, %v584_v38  ;;  %v1694_v45 = vadd.f32 %v681_v40, %v1515_v17  ;;  %v1300_v17 = vld [vmem:[%s1857_s4 + $0x28] sm:$0xff] }
 0x310   :  { %v686_v36 = vpop.f32.mrf.mxu1  ;;  %1304 = vmatmul.mubr.msk.f32.gmra.mxu0 %vm305_vm1, %v1300_v17 }
 0x311   :  { %v687_v37 = vadd.f32 %v686_v36, %v589_v35  ;;  %843 = vmatprep.mubr.f32.mxu0 %v1393_v2 }
 0x312   :  { %v688_v39 = vpop.f32.mrf.mxu1 }
 0x313   :  { %v1687_v41 = vadd.f32 %v687_v37, %v1535_v24  ;;  %v689_v42 = vadd.f32 %v688_v39, %v589_v35  ;;  %v1701_v24 = vadd.f32 %v683_v43, %v1568_v34  ;;  %v1314_v34 = vld [vmem:[%s1856_s5 + $0x38] sm:$0xff]  ;;  %v835_v35 = vpop.f32.mrf.mxu0 }
 0x314   :  { %v1797_v31 = vpop.f32.mrf.mxu1 }
 0x315   :  { %v1690_v44 = vadd.f32 %v689_v42, %v1550_v29  ;;  %730 = vrot.lane.b32.xlu0 %v1687_v41, %s1397_s25  ;;  %v1301_v29 = vld [vmem:[%s1857_s4 + $0x30] sm:$0xff] }
 0x316   :  { %1305 = vmatmul.mubr.msk.f32.gmra.mxu0 %vm305_vm1, %v1301_v29  ;;  %v1799_v33 = vpop.f32.mrf.mxu1 }
 0x317   :  { %734 = vrot.lane.b32.xlu1 %v1690_v44, %s1397_s25  ;;  %849 = vmatprep.mubr.f32.mxu0 %v1393_v2 }
 0x318   :  { %v1801_v36 = vpop.f32.mrf.mxu1 }
 0x319   :  { %728 = vrot.lane.b32.xlu0 %v1694_v45, %s1397_s25 }
 0x31a   :  { %1306 = vmatmul.mubr.msk.f32.gmra.mxu0 %vm305_vm1, %v1302_v50  ;;  %v1803_v38 = vpop.f32.mrf.mxu1 }
 0x31b   :  { %732 = vrot.lane.b32.xlu1 %v1701_v24, %s1397_s25  ;;  %1126 = vmatprep.mubr.f32.mxu0 %v1393_v2 }
 0x31d   :  { %713 = vrot.lane.b32.xlu0 %v1687_v41, %s1398_s28 }
 0x31f   :  { %717 = vrot.lane.b32.xlu1 %v1690_v44, %s1398_s28 }
 0x321   :  { %711 = vrot.lane.b32.xlu0 %v1694_v45, %s1398_s28 }
 0x323   :  { %715 = vrot.lane.b32.xlu1 %v1701_v24, %s1398_s28 }
 0x325   :  { %979 = vperm.xlu0 %1339, %v1314_v34  }
 0x327   :  { %974 = vperm.xlu1 %1340, %v1313_v49  }
 0x329   :  { %969 = vperm.xlu0 %1339, %v1312_v51  }
 0x32b   :  { %964 = vperm.xlu1 %1340, %v1311_v52  }
 0x32d   :  { %598 = vperm.xlu0 %1339, %v580_v53  }
 0x32f   :  { %1047 = vperm.xlu1 %1340, %v1326_v54  }
 0x331   :  { %593 = vperm.xlu0 %1339, %v579_v55  }
 0x333   :  { %1042 = vperm.xlu1 %1340, %v1325_v56  }
 0x335   :  { %1157 = vperm.xlu0 %1339, %v1153_v57  }
 0x337   :  { %1162 = vperm.xlu1 %1340, %v1154_v58  }
 0x387   :  { %v731_v59 = vpop.permute.xlu0 %730 }
 0x389   :  { %v735_v62 = vpop.permute.xlu1 %734 }
 0x38a   :  { %v738_v63 = vsel %vm257_vm9, %v731_v59, %v735_v62  ;;  %v740_v0 = vsel %vm257_vm9, %v735_v62, %v731_v59 }
 0x38b   :  { %v743_v1 = vmul.f32 %v1277_v60, %v738_v63  ;;  %v744_v3 = vmul.f32 %v1278_v61, %v740_v0  ;;  %v729_v4 = vpop.permute.xlu0 %728 }
 0x38d   :  { %888 = vmatprep.subr.mxu1 %v744_v3  ;;  %v733_v5 = vpop.permute.xlu1 %732 }
 0x38e   :  { %v737_v6 = vsel %vm257_vm9, %v729_v4, %v733_v5  ;;  %v739_v7 = vsel %vm257_vm9, %v733_v5, %v729_v4  ;;  %889 = vmatpush1.msra.mxu1 %v743_v1 }
 0x38f   :  { %v741_v8 = vmul.f32 %v1277_v60, %v737_v6  ;;  %v742_v9 = vmul.f32 %v1278_v61, %v739_v7  ;;  %v714_v10 = vpop.permute.xlu0 %713 }
 0x391   :  { %v718_v11 = vpop.permute.xlu1 %717  ;;  %890 = vmatprep.subr.mxu1 %v742_v9 }
 0x392   :  { %v721_v13 = vsel %vm719_vm12, %v714_v10, %v718_v11  ;;  %891 = vmatpush1.msra.mxu1 %v741_v8  ;;  %v723_v15 = vsel %vm719_vm12, %v718_v11, %v714_v10 }
 0x393   :  { %892 = vmatprep.subr.mxu1 %v1690_v44  ;;  %v727_v48 = vmul.f32 %v1274_v12, %v721_v13  ;;  %v712_v16 = vpop.permute.xlu0 %711  ;;  %v726_v21 = vmul.f32 %v1273_v14, %v723_v15 }
 0x394   :  { %893 = vmatpush1.msra.mxu1 %v1687_v41 }
 0x395   :  { %v716_v18 = vpop.permute.xlu1 %715  ;;  %894 = vmatprep.subr.mxu1 %v1701_v24 }
 0x396   :  { %v720_v22 = vsel %vm719_vm12, %v712_v16, %v716_v18  ;;  %v722_v23 = vsel %vm719_vm12, %v716_v18, %v712_v16  ;;  %895 = vmatpush1.msra.mxu1 %v1694_v45 }
 0x397   :  { %v724_v25 = vmul.f32 %v1273_v14, %v722_v23  ;;  %v725_v26 = vmul.f32 %v1274_v12, %v720_v22  ;;  %896 = vmatprep.subr.mxu1 %v727_v48 }
 0x398   :  { %897 = vmatpush1.msra.mxu1 %v726_v21 }
 0x399   :  { %898 = vmatprep.subr.mxu1 %v725_v26 }
 0x39a   :  { %899 = vmatpush1.msra.mxu1 %v724_v25 }
 0x39b   :  { %1307 = vmatmul.mubr.msk.f32.vlgmr.msra.gmra.mxu1 %vm407_vm7, %v1295_v27 }
 0x39c   :  { %938 = vmatprep.mubr.f32.mxu1 %v1393_v2 }
 0x39f   :  { %1308 = vmatmul.mubr.msk.f32.gmra.mxu1 %vm407_vm7, %v1296_v46 }
 0x3a0   :  { %944 = vmatprep.mubr.f32.mxu1 %v1393_v2  ;;  %v980_v52 = vpop.permute.xlu0 %979 }
 0x3a2   :  { %v975_v24 = vpop.permute.xlu1 %974 }
 0x3a3   :  { %1309 = vmatmul.mubr.msk.f32.gmra.mxu1 %vm407_vm7, %v1297_v28 }
 0x3a4   :  { %950 = vmatprep.mubr.f32.mxu1 %v1393_v2  ;;  %v970_v3 = vpop.permute.xlu0 %969 }
 0x3a6   :  { %v965_v14 = vpop.permute.xlu1 %964 }
 0x3a7   :  { %1310 = vmatmul.mubr.msk.f32.gmra.mxu1 %vm407_vm7, %v1298_v30 }
 0x3a8   :  { %1235 = vmatprep.mubr.f32.mxu1 %v1393_v2 }
 0x3d0   :  { %v839_v37 = vpop.f32.mrf.mxu0 }
 0x3d2   :  { %v841_v39 = vpop.f32.mrf.mxu0 }
 0x3d6   :  { %v845_v42 = vpop.f32.mrf.mxu0 }
 0x3d8   :  { %v847_v45 = vpop.f32.mrf.mxu0 }
 0x3da   :  { %v851_v29 = vpop.f32.mrf.mxu0 }
 0x3dc   :  { %v853_v56 = vpop.f32.mrf.mxu0 }
 0x45b   :  { %v934_v40 = vpop.f32.mrf.mxu1 }
 0x45c   :  { %v935_v11 = vadd.f32 %v934_v40, %v833_v32  ;;  %v1320_v40 = vld [vmem:[%s1860_s6 + $0x28] sm:$0xff] }
 0x45d   :  { %v936_v41 = vpop.f32.mrf.mxu1 }
 0x45e   :  { %v937_v8 = vadd.f32 %v936_v41, %v835_v35  ;;  %v982_v18 = vadd.f32 %v965_v14, %v935_v11  ;;  %v1321_v41 = vld [vmem:[%s1860_s6 + $0x30] sm:$0xff] }
 0x45f   :  { %v940_v43 = vpop.f32.mrf.mxu1 }
 0x460   :  { %v941_v0 = vadd.f32 %v940_v43, %v839_v37  ;;  %v983_v48 = vadd.f32 %v965_v14, %v937_v8 }
 0x461   :  { %v942_v44 = vpop.f32.mrf.mxu1 }
 0x462   :  { %v943_v1 = vadd.f32 %v942_v44, %v841_v39  ;;  %v984_v4 = vadd.f32 %v970_v3, %v941_v0  ;;  %v1319_v39 = vld [vmem:[%s1860_s6 + $0x20] sm:$0xff] }
 0x463   :  { %v946_v47 = vpop.f32.mrf.mxu1 }
 0x464   :  { %v947_v17 = vadd.f32 %v946_v47, %v845_v42  ;;  %v985_v6 = vadd.f32 %v970_v3, %v943_v1  ;;  %v1322_v42 = vld [vmem:[%s1860_s6 + $0x38] sm:$0xff]  ;;  %v1151_v1 = vld [vmem:[%s1862_s8] sm:$0xff] }
 0x465   :  { %v948_v34 = vpop.f32.mrf.mxu1 }
 0x466   :  { %v986_v49 = vadd.f32 %v975_v24, %v947_v17  ;;  %v949_v50 = vadd.f32 %v948_v34, %v847_v45  ;;  %v1048_v17 = vpop.permute.xlu1 %1047 }
 0x467   :  { %v952_v51 = vpop.f32.mrf.mxu1 }
 0x468   :  { %v987_v53 = vadd.f32 %v975_v24, %v949_v50  ;;  %v953_v54 = vadd.f32 %v952_v51, %v851_v29  ;;  %v1315_v55 = vmul.f32 -1.442695, %v986_v49  ;;  %v599_v24 = vpop.permute.xlu0 %598 }
 0x469   :  { %v954_v57 = vpop.f32.mrf.mxu1 }
 0x46a   :  { %v1316_v58 = vmul.f32 -1.442695, %v987_v53  ;;  %v988_v59 = vadd.f32 %v980_v52, %v953_v54  ;;  %v955_v60 = vadd.f32 %v954_v57, %v853_v56  ;;  %v1043_v51 = vpop.permute.xlu1 %1042  ;;  %v701_v54 = vadd.f32 %v1803_v38, %v599_v24 }
 0x46b   :  { %v699_v57 = vadd.f32 %v1801_v36, %v599_v24 }
 0x46c   :  { %1365 = vpow2.f32 %v1316_v58  ;;  %v1317_v61 = vmul.f32 -1.442695, %v988_v59  ;;  %v989_v62 = vadd.f32 %v980_v52, %v955_v60  ;;  %v594_v50 = vpop.permute.xlu0 %593 }
 0x46d   :  { %1367 = vpow2.f32 %v1315_v55  ;;  %v695_v59 = vadd.f32 %v1799_v33, %v594_v50  ;;  %v1152_v33 = vld [vmem:[%s1862_s8 + $0x8] sm:$0xff] }
 0x46e   :  { %1369 = vpow2.f32 %v1317_v61  ;;  %v1318_v63 = vmul.f32 -1.442695, %v989_v62  ;;  %v693_v61 = vadd.f32 %v1797_v31, %v594_v50  ;;  %v1163_v8 = vpop.permute.xlu1 %1162 }
 0x470   :  { %1371 = vpow2.f32 %v1318_v63  ;;  %v1158_v31 = vpop.permute.xlu0 %1157 }
 0x471   :  { %1373 = vtanh.f32 %v984_v4 }
 0x472   :  { %1375 = vtanh.f32 %v985_v6 }
 0x479   :  { %v1366_v5 = vpop.eup %1365 }
 0x47a   :  { %v1368_v7 = vpop.eup %1367  ;;  %v1007_v9 = vadd.f32 1.0, %v1366_v5 }
 0x47b   :  { %v1370_v10 = vpop.eup %1369  ;;  %v1006_v15 = vadd.f32 1.0, %v1368_v7 }
 0x47c   :  { %v1008_v12 = vadd.f32 1.0, %v1370_v10  ;;  %1377 = vrcp.f32 %v1007_v9 }
 0x47d   :  { %v1372_v13 = vpop.eup %1371 }
 0x47e   :  { %v1009_v16 = vadd.f32 1.0, %v1372_v13  ;;  %1379 = vrcp.f32 %v1008_v12  ;;  %v1374_v21 = vpop.eup %1373 }
 0x47f   :  { %v1376_v22 = vpop.eup %1375 }
 0x480   :  { %1381 = vrcp.f32 %v1009_v16 }
 0x481   :  { %1383 = vrcp.f32 %v1006_v15 }
 0x482   :  { %1385 = vtanh.f32 %v983_v48 }
 0x483   :  { %1387 = vtanh.f32 %v982_v18 }
 0x489   :  { %v1378_v23 = vpop.eup %1377 }
 0x48b   :  { %v1380_v25 = vpop.eup %1379 }
 0x48c   :  { %v1020_v30 = vmul.f32 %v1380_v25, %v1374_v21 }
 0x48d   :  { %v1382_v26 = vpop.eup %1381 }
 0x48e   :  { %v1384_v27 = vpop.eup %1383  ;;  %v1021_v46 = vmul.f32 %v1382_v26, %v1376_v22 }
 0x48f   :  { %v1386_v28 = vpop.eup %1385 }
 0x490   :  { %v1388_v32 = vpop.eup %1387  ;;  %1090 = vmatprep.subr.mxu0 %v1021_v46  ;;  %v1019_v35 = vmul.f32 %v1386_v28, %v1378_v23 }
 0x491   :  { %1091 = vmatpush1.msra.mxu0 %v1020_v30  ;;  %v1018_v37 = vmul.f32 %v1388_v32, %v1384_v27 }
 0x492   :  { %1092 = vmatprep.subr.mxu0 %v1019_v35 }
 0x493   :  { %1093 = vmatpush1.msra.mxu0 %v1018_v37 }
 0x494   :  { %1327 = vmatmul.mubr.msk.f32.vlgmr.msra.gmra.mxu0 %vm601_vm8, %v1319_v39 }
 0x495   :  { %1130 = vmatprep.mubr.f32.mxu0 %v1393_v2 }
 0x498   :  { %1328 = vmatmul.mubr.msk.f32.gmra.mxu0 %vm601_vm8, %v1320_v40 }
 0x499   :  { %1134 = vmatprep.mubr.f32.mxu0 %v1393_v2 }
 0x49c   :  { %1329 = vmatmul.mubr.msk.f32.gmra.mxu0 %vm601_vm8, %v1321_v41 }
 0x49d   :  { %1140 = vmatprep.mubr.f32.mxu0 %v1393_v2 }
 0x4a0   :  { %1330 = vmatmul.mubr.msk.f32.gmra.mxu0 %vm601_vm8, %v1322_v42 }
 0x554   :  { %v1128_v43 = vpop.f32.mrf.mxu0 }
 0x556   :  { %v1129_v44 = vpop.f32.mrf.mxu0 }
 0x558   :  { %v1132_v45 = vpop.f32.mrf.mxu0 }
 0x55a   :  { %v1133_v47 = vpop.f32.mrf.mxu0 }
 0x55c   :  { %v1136_v29 = vpop.f32.mrf.mxu0 }
 0x55d   :  { %v1137_v58 = vadd.f32 %v1136_v29, %v1043_v51 }
 0x55e   :  { %v1138_v34 = vpop.f32.mrf.mxu0 }
 0x55f   :  { %v1139_v55 = vadd.f32 %v1138_v34, %v1043_v51  ;;  %v1147_v0 = vadd.f32 %v1137_v58, %v693_v61 }
 0x560   :  { %v1142_v49 = vpop.f32.mrf.mxu0 }
 0x561   :  { %v1143_v52 = vadd.f32 %v1142_v49, %v1048_v17  ;;  %v1148_v63 = vadd.f32 %v1139_v55, %v695_v59 }
 0x562   :  { %v1144_v53 = vpop.f32.mrf.mxu0 }
 0x563   :  { %v1145_v56 = vadd.f32 %v1144_v53, %v1048_v17  ;;  %v1149_v62 = vadd.f32 %v1143_v52, %v699_v57 }
 0x565   :  { %v1150_v60 = vadd.f32 %v1145_v56, %v701_v54 }
 0x567   :  { %1199 = vmatprep.subr.mxu1 %v1150_v60 }
 0x568   :  { %1200 = vmatpush1.msra.mxu1 %v1149_v62 }
 0x569   :  { %1201 = vmatprep.subr.mxu1 %v1148_v63 }
 0x56a   :  { %1202 = vmatpush1.msra.mxu1 %v1147_v0 }
 0x56b   :  { %1331 = vmatmul.mubr.msk.f32.vlgmr.msra.gmra.mxu1 %vm601_vm8, %v1151_v1 }
 0x56c   :  { %1241 = vmatprep.mubr.f32.mxu1 %v1393_v2 }
 0x56f   :  { %1332 = vmatmul.mubr.msk.f32.gmra.mxu1 %vm601_vm8, %v1152_v33 }
 0x62b   :  { %v1237_v36 = vpop.f32.mrf.mxu1 }
 0x62c   :  { %v1238_v38 = vadd.f32 %v1237_v36, %v1158_v31 }
 0x62d   :  { %v1239_v3 = vpop.f32.mrf.mxu1 }
 0x62e   :  { %v1248_v4 = vmul.f32 1.442695, %v1238_v38  ;;  %1258 = vst [vmem:[%s1863_s13] sm:$0xff] %v1238_v38  ;;  %v1240_v5 = vadd.f32 %v1239_v3, %v1158_v31 }
 0x62f   :  { %v1243_v2 = vpop.f32.mrf.mxu1 }
 0x630   :  { %1389 = vpow2.f32 %v1248_v4  ;;  %v1250_v6 = vmul.f32 1.442695, %v1240_v5  ;;  %1259 = vst [vmem:[%s1863_s13 + $0x8] sm:$0xff] %v1240_v5  ;;  %v1244_v10 = vadd.f32 %v1243_v2, %v1163_v8 }
 0x631   :  { %v1245_v9 = vpop.f32.mrf.mxu1 }
 0x632   :  { %1391 = vpow2.f32 %v1250_v6  ;;  %v1246_v14 = vadd.f32 %v1245_v9, %v1163_v8 }
 0x63d   :  { %v1390_v7 = vpop.eup %1389 }
 0x63e   :  { %v1252_v11 = vmul.f32 %v1390_v7, %v1662_v19 }
 0x63f   :  { %v1392_v12 = vpop.eup %1391 }
 0x640   :  { %v1254_v13 = vadd.f32 %v1252_v11, %v1244_v10  ;;  %v1253_v15 = vmul.f32 %v1392_v12, %v1664_v20 }
 0x642   :  { %1256 = vst [vmem:[%s1864_s12] sm:$0xff] %v1254_v13  ;;  %v1255_v48 = vadd.f32 %v1253_v15, %v1246_v14 }
 0x644   :  { %1257 = vst [vmem:[%s1864_s12 + $0x8] sm:$0xff] %v1255_v48 }

</bundles_post_ra>
